<compile_context>
chip_gen: v7x
topology: tpu7x:2x2x1
jax: 0.10.0
libtpu: 0.0.40
codegen_flags: <defaults>
</compile_context>

<pallas_src>
import functools

import jax
import jax.numpy as jnp
from jax import lax
from jax.experimental import pallas as pl
from jax.experimental.pallas import tpu as pltpu


def _round_up(x, m):
    return (x + m - 1) // m * m


# ----------------------------------------------------------------------------
# Fused kernel: conv3x3 (9 lane-aligned shifted slabs -> one matmul per column
# tile) + GroupNorm (masked, full-image stats) + ReLU + conv1x1 + per-head
# activations.  One batch item per grid step; channel-major (C, S) layout with
# the spatial axis lane-dense.  Column tiles are iterated with lax.fori_loop.
# ----------------------------------------------------------------------------
def _fused_head_kernel(x_ref, w1_ref, b1_ref, gamma_ref, beta_ref,
                       w2_ref, b2_ref, m_ref, mt_ref, mask_ref,
                       out_ref, h_scr, *,
                       wp_pad, tile_cols, n_tiles, num_classes,
                       valid_count_per_group, gn_eps):
    # Hoisted loads (constant across column tiles).
    w1 = w1_ref[...]                       # (Ctot, 9*Cin)   bf16
    b1 = b1_ref[...]                       # (Ctot, 1)       f32
    ctot = w1.shape[0]

    def compute_h(base):
        # 9 lane-aligned shifted slabs of the padded flat image (dx shifts are
        # pre-baked into the 3 host-side copies; dy*wp_pad is 128-aligned).
        slabs = [x_ref[0, dx, :, pl.ds(pl.multiple_of(base + dy * wp_pad, 128),
                                       tile_cols)]
                 for dy in range(3) for dx in range(3)]
        xcat = jnp.concatenate(slabs, axis=0)          # (9*Cin, tw) bf16
        return jnp.dot(w1, xcat, preferred_element_type=jnp.float32) + b1

    # ---- Pass 1: conv3x3 per tile, masked GN statistics, stash h. ----------
    def p1_body(i, carry):
        s_c, ss_c = carry
        base = pl.multiple_of(i * tile_cols, 128)
        h_t = compute_h(base)                          # (Ctot, tw) f32
        m_t = mask_ref[:, pl.ds(base, tile_cols)]      # (1, tw) valid mask
        hm = h_t * m_t
        s_c = s_c + jnp.sum(hm, axis=1, keepdims=True)
        ss_c = ss_c + jnp.sum(hm * h_t, axis=1, keepdims=True)
        h_scr[:, pl.ds(base, tile_cols)] = h_t.astype(h_scr.dtype)
        return s_c, ss_c

    zero = jnp.zeros((ctot, 1), jnp.float32)
    sum_c, sumsq_c = lax.fori_loop(0, n_tiles, p1_body, (zero, zero))

    # ---- GroupNorm statistics (per group, valid pixels only). --------------
    st = jnp.concatenate([sum_c, sumsq_c], axis=1)                      # (C, 2)
    gst = jnp.dot(m_ref[...], st, preferred_element_type=jnp.float32)  # (2G, 2)
    inv_n = 1.0 / valid_count_per_group
    mean_g = gst[:, 0:1] * inv_n
    ex2_g = gst[:, 1:2] * inv_n
    var_g = jnp.maximum(ex2_g - mean_g * mean_g, 0.0)
    inv_g = lax.rsqrt(var_g + gn_eps)
    mi = jnp.concatenate([mean_g, inv_g], axis=1)                       # (2G, 2)
    back = jnp.dot(mt_ref[...], mi, preferred_element_type=jnp.float32)  # (C,2)
    scale_c = back[:, 1:2] * gamma_ref[...]                 # inv * gamma
    shift_c = beta_ref[...] - back[:, 0:1] * scale_c        # beta - mean*scale

    # ---- Pass 2: normalize + ReLU + conv1x1 + per-head activations. --------
    w2 = w2_ref[...]                       # (Cout_pad, Ctot) bf16
    b2 = b2_ref[...]                       # (Cout_pad, 1)    f32
    n_sig = num_classes + 3                # rows needing a sigmoid (cls + dim)
    row_s = lax.broadcasted_iota(jnp.int32, (n_sig, 1), 0)   # hoisted iota
    is_cls = row_s < num_classes

    def p2_body(i, _):
        base = pl.multiple_of(i * tile_cols, 128)
        h_t = h_scr[:, pl.ds(base, tile_cols)].astype(jnp.float32)
        hr = jnp.maximum(h_t * scale_c + shift_c, 0.0)             # GN + ReLU
        o_t = jnp.dot(w2, hr.astype(jnp.bfloat16),
                      preferred_element_type=jnp.float32) + b2     # (Cpad, tw)
        # Sigmoid only on the rows that need it (class + dim, contiguous).
        sg = jax.nn.sigmoid(o_t[:n_sig])
        res_sig = jnp.where(is_cls, jnp.clip(sg, 1e-4, 1.0 - 1e-4), sg - 0.5)
        # Orientation norm from just the two ori rows (no full-height reduce).
        o_ori = o_t[n_sig:n_sig + 2]
        nrm2 = jnp.sum(o_ori * o_ori, axis=0, keepdims=True)
        res_ori = o_ori * lax.rsqrt(jnp.maximum(nrm2, 1e-24))
        res = jnp.concatenate([res_sig, res_ori, o_t[n_sig + 2:]], axis=0)
        out_ref[0, :, pl.ds(base, tile_cols)] = res.astype(out_ref.dtype)
        return 0

    lax.fori_loop(0, n_tiles, p2_body, 0)


# ----------------------------------------------------------------------------
# Host-side glue.
# ----------------------------------------------------------------------------
def _flatten_conv3x3(w):
    # (Cout, Cin, 3, 3) -> (Cout, 9*Cin); column order (dy, dx, cin).
    co, ci = w.shape[0], w.shape[1]
    return jnp.transpose(w, (0, 2, 3, 1)).reshape(co, 9 * ci)


def smoke_head_forward(x_nchw, params, *, num_groups, tile_cols=512):
    N, cin, H, W = x_nchw.shape
    pc, pr = params["class"], params["reg"]
    chead = pc["w1"].shape[0]
    ncls = pc["w2"].shape[0]
    nreg = pr["w2"].shape[0]
    assert nreg == 8, "SMOKE regression head is 8 channels (1+2 raw, 3 dim, 2 ori)"
    assert tile_cols % 128 == 0
    ctot = 2 * chead
    cg = chead // num_groups
    g2 = 2 * num_groups
    cout_pad = _round_up(ncls + nreg, 8)          # 16-sublane (unmasked) stores

    # Lane-aligned padded flat image: each row padded to wp_pad (mult of 128).
    hp = H + 2
    wp_pad = _round_up(W + 2, 128)
    s0 = hp * wp_pad
    s_cols = _round_up(s0, tile_cols)             # whole tiles for fori_loop
    n_tiles = s_cols // tile_cols
    sx = s_cols + 2 * wp_pad                      # covers dy in {0,1,2} shifts

    # --- VMEM budget: pick scratch dtype + vmem limit from device capacity. --
    try:
        vmem_cap = int(pltpu.get_tpu_info().vmem_capacity_bytes)
    except Exception:
        vmem_cap = 128 * 1024 * 1024
    x_bytes = 3 * cin * sx * 2                                # bf16, 3 dx copies
    out_bytes = cout_pad * s_cols * 4
    const_bytes = (ctot * 9 * cin * 2 + cout_pad * ctot * 2 + 4 * ctot * 4
                   + cout_pad * 4 + 2 * g2 * ctot * 4 + s_cols * 4)
    fixed = 2 * x_bytes + 2 * out_bytes + 2 * const_bytes     # pipelined bufs
    h_dtype = (jnp.float32
               if fixed + ctot * s_cols * 4 <= int(0.7 * vmem_cap)
               else jnp.bfloat16)
    h_bytes = ctot * s_cols * jnp.dtype(h_dtype).itemsize
    vmem_limit = max(32 * 1024 * 1024,
                     min(int(0.8 * vmem_cap),
                         fixed + h_bytes + 8 * 1024 * 1024))

    # --- Inputs: zero-padded, row-padded, flattened; 3 dx-pre-shifted copies.
    xpad = jnp.pad(x_nchw.astype(jnp.float32),
                   ((0, 0), (0, 0), (1, 1), (1, 1 + wp_pad - (W + 2))))
    x_flat = xpad.reshape(N, cin, s0)
    copies = [jnp.pad(x_flat, ((0, 0), (0, 0),
                               (wp_pad + 1 - d, sx - s0 - (wp_pad + 1 - d))))
              for d in range(3)]
    x_ext = jnp.stack(copies, axis=1).astype(jnp.bfloat16)    # (N, 3, Cin, sx)

    # --- Fused weights (class rows first, then reg rows in the fused column).
    w1 = jnp.concatenate([_flatten_conv3x3(pc["w1"]),
                          _flatten_conv3x3(pr["w1"])], axis=0).astype(jnp.bfloat16)
    b1 = jnp.concatenate([pc["b1"], pr["b1"]])[:, None].astype(jnp.float32)
    gamma = jnp.concatenate([pc["gamma"], pr["gamma"]])[:, None].astype(jnp.float32)
    beta = jnp.concatenate([pc["beta"], pr["beta"]])[:, None].astype(jnp.float32)

    # 1x1 conv, block-diagonal, output rows REORDERED as
    # [class(ncls) | dim(3) | ori(2) | raw(3) | zero-pad] (host un-permutes).
    w2c = pc["w2"][:, :, 0, 0].astype(jnp.float32)
    w2r = pr["w2"][:, :, 0, 0].astype(jnp.float32)
    w2 = jnp.zeros((cout_pad, ctot), jnp.float32)
    w2 = w2.at[0:ncls, :chead].set(w2c)
    w2 = w2.at[ncls:ncls + 3, chead:].set(w2r[3:6])           # dims
    w2 = w2.at[ncls + 3:ncls + 5, chead:].set(w2r[6:8])       # orientation
    w2 = w2.at[ncls + 5:ncls + 8, chead:].set(w2r[0:3])       # raw (depth/kpt)
    w2 = w2.astype(jnp.bfloat16)
    b2 = jnp.zeros((cout_pad,), jnp.float32)
    b2 = b2.at[0:ncls].set(pc["b2"])
    b2 = b2.at[ncls:ncls + 3].set(pr["b2"][3:6])
    b2 = b2.at[ncls + 3:ncls + 5].set(pr["b2"][6:8])
    b2 = b2.at[ncls + 5:ncls + 8].set(pr["b2"][0:3])
    b2 = b2[:, None]

    # One-hot group-membership matrices (hoisted out of the kernel hot loop).
    grp = jnp.arange(ctot) // cg
    M = (grp[None, :] == jnp.arange(g2)[:, None]).astype(jnp.float32)   # (2G, C)
    MT = M.T                                                            # (C, 2G)

    # Valid-pixel mask in the padded flat layout.
    j = jnp.arange(s_cols)
    yy, xx = j // wp_pad, j % wp_pad
    mask = ((yy >= 1) & (yy <= H) & (xx >= 1) & (xx <= W))
    mask = mask.astype(jnp.float32)[None, :]                            # (1, S)

    kernel = functools.partial(
        _fused_head_kernel, wp_pad=wp_pad, tile_cols=tile_cols, n_tiles=n_tiles,
        num_classes=ncls, valid_count_per_group=float(H * W * cg), gn_eps=1e-5)

    def _const(shape):
        zeros = (0,) * len(shape)
        # Constant index_map -> single-buffer to save VMEM.
        return pl.BlockSpec(shape, lambda n: zeros, pipeline_mode=pl.Buffered(1))

    out = pl.pallas_call(
        kernel,
        out_shape=jax.ShapeDtypeStruct((N, cout_pad, s_cols), jnp.float32),
        grid_spec=pltpu.PrefetchScalarGridSpec(
            num_scalar_prefetch=0,
            grid=(N,),
            in_specs=[
                pl.BlockSpec((1, 3, cin, sx), lambda n: (n, 0, 0, 0)),
                _const((ctot, 9 * cin)),
                _const((ctot, 1)),
                _const((ctot, 1)),
                _const((ctot, 1)),
                _const((cout_pad, ctot)),
                _const((cout_pad, 1)),
                _const((g2, ctot)),
                _const((ctot, g2)),
                _const((1, s_cols)),
            ],
            out_specs=pl.BlockSpec((1, cout_pad, s_cols), lambda n: (n, 0, 0)),
            scratch_shapes=[pltpu.VMEM((ctot, s_cols), h_dtype)],
        ),
        compiler_params=pltpu.CompilerParams(
            dimension_semantics=("parallel",),
            vmem_limit_bytes=int(vmem_limit)),
    )(x_ext, w1, b1, gamma, beta, w2, b2, M, MT, mask)

    # Strip halo / lane / sublane padding; un-permute channels; split heads.
    out = out[:, :, :s0].reshape(N, cout_pad, hp, wp_pad)[:, :, 1:1 + H, 1:1 + W]
    head_class = out[:, :ncls]
    dim = out[:, ncls:ncls + 3]
    ori = out[:, ncls + 3:ncls + 5]
    raw = out[:, ncls + 5:ncls + 8]
    head_regression = jnp.concatenate([raw, dim, ori], axis=1)
    # TODO(synk): post_processor / loss_evaluator not implemented (target-dependent).
    return [head_class, head_regression]


# ----------------------------------------------------------------------------
# Pure-JAX f32 reference (mirrors the PyTorch predictor) for correctness check.
# ----------------------------------------------------------------------------
def _ref_forward(x, params, *, num_groups):
    def conv(x, w, b, pad):
        y = lax.conv_general_dilated(
            x, w, (1, 1), [(pad, pad), (pad, pad)],
            dimension_numbers=("NCHW", "OIHW", "NCHW"))
        return y + b[None, :, None, None]

    def gn(x, gamma, beta, eps=1e-5):
        N, C, H, W = x.shape
        xg = x.reshape(N, num_groups, C // num_groups, H, W)
        mean = xg.mean(axis=(2, 3, 4), keepdims=True)
        var = ((xg - mean) ** 2).mean(axis=(2, 3, 4), keepdims=True)
        xg = (xg - mean) / jnp.sqrt(var + eps)
        return xg.reshape(N, C, H, W) * gamma[None, :, None, None] + \
            beta[None, :, None, None]

    def head(p):
        h = conv(x, p["w1"], p["b1"], 1)
        h = jnp.maximum(gn(h, p["gamma"], p["beta"]), 0.0)
        return conv(h, p["w2"], p["b2"], 0)

    hc = jnp.clip(jax.nn.sigmoid(head(params["class"])), 1e-4, 1.0 - 1e-4)
    hr = head(params["reg"])
    dim = jax.nn.sigmoid(hr[:, 3:6]) - 0.5
    ori = hr[:, 6:8]
    ori = ori / jnp.maximum(jnp.sqrt(jnp.sum(ori * ori, axis=1, keepdims=True)),
                            1e-12)
    hr = jnp.concatenate([hr[:, :3], dim, ori], axis=1)
    return [hc, hr]


# ----------------------------------------------------------------------------
def _init_params(key, in_channels, head_conv, num_classes, num_regression):
    ks = jax.random.split(key, 8)

    def head_params(k, cout, final_bias):
        k1, k2, k3, k4 = jax.random.split(k, 4)
        return dict(
            w1=jax.random.normal(k1, (head_conv, in_channels, 3, 3),
                                 jnp.float32) * 0.1,
            b1=jax.random.normal(k2, (head_conv,), jnp.float32) * 0.1,
            gamma=1.0 + jax.random.normal(k3, (head_conv,), jnp.float32) * 0.1,
            beta=jax.random.normal(k4, (head_conv,), jnp.float32) * 0.1,
            w2=jax.random.normal(ks[7], (cout, head_conv, 1, 1),
                                 jnp.float32) * 0.1,
            b2=jnp.full((cout,), final_bias, jnp.float32),
        )

    return {"class": head_params(ks[0], num_classes, -2.19),
            "reg": head_params(ks[1], num_regression, 0.0)}


if __name__ == "__main__":
    key = jax.random.PRNGKey(0)
    kx, kp = jax.random.split(key)

    N, Cin, H, W = 2, 16, 16, 16
    head_conv, num_groups = 32, 8
    num_classes, num_regression = 3, 8    # regression channels (1, 2, 3, 2)

    x = jax.random.normal(kx, (N, Cin, H, W), jnp.float32)
    params = _init_params(kp, Cin, head_conv, num_classes, num_regression)

    fwd = jax.jit(functools.partial(smoke_head_forward, num_groups=num_groups))
    out = jax.block_until_ready(fwd(x, params))

    ref = jax.block_until_ready(_ref_forward(x, params, num_groups=num_groups))

    assert out[0].shape == (N, num_classes, H, W)
    assert out[1].shape == (N, num_regression, H, W)
    # bf16 MXU operands (f32 accumulation) -> slightly looser tolerance.
    for o, r in zip(out, ref):
        err = float(jnp.max(jnp.abs(o - r)))
        assert jnp.allclose(o, r, atol=3e-2, rtol=3e-2), err

    print("KERNEL_OK")
</pallas_src>

<mosaic_0001>
module attributes {stable_mosaic.version = 11 : i64} {
  func.func @_fused_head_kernel(%arg0: i32, %arg1: memref<1x3x16x2816xbf16, #tpu.memory_space<vmem>>, %arg2: memref<64x144xbf16, #tpu.memory_space<vmem>>, %arg3: memref<64x1xf32, #tpu.memory_space<vmem>>, %arg4: memref<64x1xf32, #tpu.memory_space<vmem>>, %arg5: memref<64x1xf32, #tpu.memory_space<vmem>>, %arg6: memref<16x64xbf16, #tpu.memory_space<vmem>>, %arg7: memref<16x1xf32, #tpu.memory_space<vmem>>, %arg8: memref<16x64xf32, #tpu.memory_space<vmem>>, %arg9: memref<64x16xf32, #tpu.memory_space<vmem>>, %arg10: memref<1x2560xf32, #tpu.memory_space<vmem>>, %arg11: memref<1x16x2560xf32, #tpu.memory_space<vmem>>, %arg12: memref<64x2560xf32, #tpu.memory_space<vmem>>) attributes {dimension_semantics = [#tpu.dimension_semantics<parallel>], iteration_bounds = array<i64: 2>, scalar_prefetch = 0 : i64, scratch_operands = 1 : i64, tpu.core_type = #tpu.core_type<tc>, window_params = [{transform_indices = @transform_0, window_bounds = array<i64: 1, 3, 16, 2816>}, {pipeline_mode = #tpu.pipeline_mode<synchronous>, transform_indices = @transform_1, window_bounds = array<i64: 64, 144>}, {pipeline_mode = #tpu.pipeline_mode<synchronous>, transform_indices = @transform_2, window_bounds = array<i64: 64, 1>}, {pipeline_mode = #tpu.pipeline_mode<synchronous>, transform_indices = @transform_3, window_bounds = array<i64: 64, 1>}, {pipeline_mode = #tpu.pipeline_mode<synchronous>, transform_indices = @transform_4, window_bounds = array<i64: 64, 1>}, {pipeline_mode = #tpu.pipeline_mode<synchronous>, transform_indices = @transform_5, window_bounds = array<i64: 16, 64>}, {pipeline_mode = #tpu.pipeline_mode<synchronous>, transform_indices = @transform_6, window_bounds = array<i64: 16, 1>}, {pipeline_mode = #tpu.pipeline_mode<synchronous>, transform_indices = @transform_7, window_bounds = array<i64: 16, 64>}, {pipeline_mode = #tpu.pipeline_mode<synchronous>, transform_indices = @transform_8, window_bounds = array<i64: 64, 16>}, {pipeline_mode = #tpu.pipeline_mode<synchronous>, transform_indices = @transform_9, window_bounds = array<i64: 1, 2560>}, {transform_indices = @transform_10, window_bounds = array<i64: 1, 16, 2560>}]} {
    %c0 = arith.constant 0 : index
    %c0_0 = arith.constant 0 : index
    %0 = vector.load %arg2[%c0, %c0_0] : memref<64x144xbf16, #tpu.memory_space<vmem>>, vector<64x144xbf16>
    %c0_1 = arith.constant 0 : index
    %c0_2 = arith.constant 0 : index
    %1 = vector.load %arg3[%c0_1, %c0_2] : memref<64x1xf32, #tpu.memory_space<vmem>>, vector<64x1xf32>
    %cst = arith.constant 0.000000e+00 : f32
    %2 = vector.broadcast %cst : f32 to vector<64x1xf32>
    %c0_i32 = arith.constant 0 : i32
    %c5_i32 = arith.constant 5 : i32
    %3 = arith.addi %c0_i32, %c5_i32 : i32
    %c1_i32 = arith.constant 1 : i32
    %4:2 = scf.for %arg13 = %c0_i32 to %3 step %c1_i32 iter_args(%arg14 = %2, %arg15 = %2) -> (vector<64x1xf32>, vector<64x1xf32>)  : i32 {
      %c512_i32 = arith.constant 512 : i32
      %37 = arith.muli %arg13, %c512_i32 : i32
      %38 = tpu.assume_multiple %37, 128 : i32
      %c0_i32_26 = arith.constant 0 : i32
      %39 = arith.addi %38, %c0_i32_26 : i32
      %40 = tpu.assume_multiple %39, 128 : i32
      %c0_27 = arith.constant 0 : index
      %c0_28 = arith.constant 0 : index
      %c0_29 = arith.constant 0 : index
      %41 = arith.index_cast %40 : i32 to index
      %42 = vector.load %arg1[%c0_27, %c0_28, %c0_29, %41] : memref<1x3x16x2816xbf16, #tpu.memory_space<vmem>>, vector<1x1x16x512xbf16>
      %43 = vector.shape_cast %42 : vector<1x1x16x512xbf16> to vector<16x512xbf16>
      %c0_i32_30 = arith.constant 0 : i32
      %44 = arith.addi %38, %c0_i32_30 : i32
      %45 = tpu.assume_multiple %44, 128 : i32
      %c0_31 = arith.constant 0 : index
      %c1 = arith.constant 1 : index
      %c0_32 = arith.constant 0 : index
      %46 = arith.index_cast %45 : i32 to index
      %47 = vector.load %arg1[%c0_31, %c1, %c0_32, %46] : memref<1x3x16x2816xbf16, #tpu.memory_space<vmem>>, vector<1x1x16x512xbf16>
      %48 = vector.shape_cast %47 : vector<1x1x16x512xbf16> to vector<16x512xbf16>
      %c0_i32_33 = arith.constant 0 : i32
      %49 = arith.addi %38, %c0_i32_33 : i32
      %50 = tpu.assume_multiple %49, 128 : i32
      %c0_34 = arith.constant 0 : index
      %c2 = arith.constant 2 : index
      %c0_35 = arith.constant 0 : index
      %51 = arith.index_cast %50 : i32 to index
      %52 = vector.load %arg1[%c0_34, %c2, %c0_35, %51] : memref<1x3x16x2816xbf16, #tpu.memory_space<vmem>>, vector<1x1x16x512xbf16>
      %53 = vector.shape_cast %52 : vector<1x1x16x512xbf16> to vector<16x512xbf16>
      %c128_i32 = arith.constant 128 : i32
      %54 = arith.addi %38, %c128_i32 : i32
      %55 = tpu.assume_multiple %54, 128 : i32
      %c0_36 = arith.constant 0 : index
      %c0_37 = arith.constant 0 : index
      %c0_38 = arith.constant 0 : index
      %56 = arith.index_cast %55 : i32 to index
      %57 = vector.load %arg1[%c0_36, %c0_37, %c0_38, %56] : memref<1x3x16x2816xbf16, #tpu.memory_space<vmem>>, vector<1x1x16x512xbf16>
      %58 = vector.shape_cast %57 : vector<1x1x16x512xbf16> to vector<16x512xbf16>
      %c128_i32_39 = arith.constant 128 : i32
      %59 = arith.addi %38, %c128_i32_39 : i32
      %60 = tpu.assume_multiple %59, 128 : i32
      %c0_40 = arith.constant 0 : index
      %c1_41 = arith.constant 1 : index
      %c0_42 = arith.constant 0 : index
      %61 = arith.index_cast %60 : i32 to index
      %62 = vector.load %arg1[%c0_40, %c1_41, %c0_42, %61] : memref<1x3x16x2816xbf16, #tpu.memory_space<vmem>>, vector<1x1x16x512xbf16>
      %63 = vector.shape_cast %62 : vector<1x1x16x512xbf16> to vector<16x512xbf16>
      %c128_i32_43 = arith.constant 128 : i32
      %64 = arith.addi %38, %c128_i32_43 : i32
      %65 = tpu.assume_multiple %64, 128 : i32
      %c0_44 = arith.constant 0 : index
      %c2_45 = arith.constant 2 : index
      %c0_46 = arith.constant 0 : index
      %66 = arith.index_cast %65 : i32 to index
      %67 = vector.load %arg1[%c0_44, %c2_45, %c0_46, %66] : memref<1x3x16x2816xbf16, #tpu.memory_space<vmem>>, vector<1x1x16x512xbf16>
      %68 = vector.shape_cast %67 : vector<1x1x16x512xbf16> to vector<16x512xbf16>
      %c256_i32 = arith.constant 256 : i32
      %69 = arith.addi %38, %c256_i32 : i32
      %70 = tpu.assume_multiple %69, 128 : i32
      %c0_47 = arith.constant 0 : index
      %c0_48 = arith.constant 0 : index
      %c0_49 = arith.constant 0 : index
      %71 = arith.index_cast %70 : i32 to index
      %72 = vector.load %arg1[%c0_47, %c0_48, %c0_49, %71] : memref<1x3x16x2816xbf16, #tpu.memory_space<vmem>>, vector<1x1x16x512xbf16>
      %73 = vector.shape_cast %72 : vector<1x1x16x512xbf16> to vector<16x512xbf16>
      %c256_i32_50 = arith.constant 256 : i32
      %74 = arith.addi %38, %c256_i32_50 : i32
      %75 = tpu.assume_multiple %74, 128 : i32
      %c0_51 = arith.constant 0 : index
      %c1_52 = arith.constant 1 : index
      %c0_53 = arith.constant 0 : index
      %76 = arith.index_cast %75 : i32 to index
      %77 = vector.load %arg1[%c0_51, %c1_52, %c0_53, %76] : memref<1x3x16x2816xbf16, #tpu.memory_space<vmem>>, vector<1x1x16x512xbf16>
      %78 = vector.shape_cast %77 : vector<1x1x16x512xbf16> to vector<16x512xbf16>
      %c256_i32_54 = arith.constant 256 : i32
      %79 = arith.addi %38, %c256_i32_54 : i32
      %80 = tpu.assume_multiple %79, 128 : i32
      %c0_55 = arith.constant 0 : index
      %c2_56 = arith.constant 2 : index
      %c0_57 = arith.constant 0 : index
      %81 = arith.index_cast %80 : i32 to index
      %82 = vector.load %arg1[%c0_55, %c2_56, %c0_57, %81] : memref<1x3x16x2816xbf16, #tpu.memory_space<vmem>>, vector<1x1x16x512xbf16>
      %83 = vector.shape_cast %82 : vector<1x1x16x512xbf16> to vector<16x512xbf16>
      %84 = tpu.concatenate %43, %48, %53, %58, %63, %68, %73, %78, %83 in 0 : vector<16x512xbf16>, vector<16x512xbf16>, vector<16x512xbf16>, vector<16x512xbf16>, vector<16x512xbf16>, vector<16x512xbf16>, vector<16x512xbf16>, vector<16x512xbf16>, vector<16x512xbf16> -> vector<144x512xbf16>
      %cst_58 = arith.constant dense<0.000000e+00> : vector<64x512xf32>
      %85 = tpu.matmul %0, %84, %cst_58 {dimension_numbers = #tpu.dot_dimension_numbers<[1], [0], [0], [1], [0, 0, 1, 1], [], []>} : vector<64x144xbf16>, vector<144x512xbf16>, vector<64x512xf32> -> vector<64x512xf32>
      %86 = vector.broadcast %1 : vector<64x1xf32> to vector<64x512xf32>
      %87 = arith.addf %85, %86 : vector<64x512xf32>
      %c0_59 = arith.constant 0 : index
      %88 = arith.index_cast %38 : i32 to index
      %89 = vector.load %arg10[%c0_59, %88] : memref<1x2560xf32, #tpu.memory_space<vmem>>, vector<1x512xf32>
      %90 = vector.broadcast %89 : vector<1x512xf32> to vector<64x512xf32>
      %91 = arith.mulf %87, %90 : vector<64x512xf32>
      %cst_60 = arith.constant dense<0.000000e+00> : vector<64xf32>
      %92 = vector.multi_reduction <add>, %91, %cst_60 [1] : vector<64x512xf32> to vector<64xf32>
      %93 = vector.shape_cast %92 : vector<64xf32> to vector<64x1xf32>
      %94 = arith.addf %arg14, %93 : vector<64x1xf32>
      %95 = arith.mulf %91, %87 : vector<64x512xf32>
      %cst_61 = arith.constant dense<0.000000e+00> : vector<64xf32>
      %96 = vector.multi_reduction <add>, %95, %cst_61 [1] : vector<64x512xf32> to vector<64xf32>
      %97 = vector.shape_cast %96 : vector<64xf32> to vector<64x1xf32>
      %98 = arith.addf %arg15, %97 : vector<64x1xf32>
      %c0_62 = arith.constant 0 : index
      %99 = arith.index_cast %38 : i32 to index
      %100 = vector.load %arg12[%c0_62, %99] : memref<64x2560xf32, #tpu.memory_space<vmem>>, vector<64x512xf32>
      tpu.vector_store %arg12[%c0_62, %99], %87 {strides = array<i32>} : memref<64x2560xf32, #tpu.memory_space<vmem>>, vector<64x512xf32>,
      scf.yield %94, %98 : vector<64x1xf32>, vector<64x1xf32>
    }
    %c5_i32_3 = arith.constant 5 : i32
    %5 = tpu.concatenate %4#0, %4#1 in 1 : vector<64x1xf32>, vector<64x1xf32> -> vector<64x2xf32>
    %c0_4 = arith.constant 0 : index
    %c0_5 = arith.constant 0 : index
    %6 = vector.load %arg8[%c0_4, %c0_5] : memref<16x64xf32, #tpu.memory_space<vmem>>, vector<16x64xf32>
    %cst_6 = arith.constant dense<0.000000e+00> : vector<16x2xf32>
    %7 = tpu.matmul %6, %5, %cst_6 {dimension_numbers = #tpu.dot_dimension_numbers<[1], [0], [0], [1], [0, 0, 1, 1], [], []>} : vector<16x64xf32>, vector<64x2xf32>, vector<16x2xf32> -> vector<16x2xf32>
    %8 = vector.extract_strided_slice %7 {offsets = [0, 0], sizes = [16, 1], strides = [1, 1]} : vector<16x2xf32> to vector<16x1xf32>
    %cst_7 = arith.constant 9.765625E-4 : f32
    %9 = vector.broadcast %cst_7 : f32 to vector<16x1xf32>
    %10 = arith.mulf %8, %9 : vector<16x1xf32>
    %11 = vector.extract_strided_slice %7 {offsets = [0, 1], sizes = [16, 1], strides = [1, 1]} : vector<16x2xf32> to vector<16x1xf32>
    %cst_8 = arith.constant 9.765625E-4 : f32
    %12 = vector.broadcast %cst_8 : f32 to vector<16x1xf32>
    %13 = arith.mulf %11, %12 : vector<16x1xf32>
    %14 = arith.mulf %10, %10 : vector<16x1xf32>
    %15 = arith.subf %13, %14 : vector<16x1xf32>
    %cst_9 = arith.constant 0.000000e+00 : f32
    %16 = vector.broadcast %cst_9 : f32 to vector<16x1xf32>
    %17 = arith.maximumf %15, %16 : vector<16x1xf32>
    %cst_10 = arith.constant 9.99999974E-6 : f32
    %18 = vector.broadcast %cst_10 : f32 to vector<16x1xf32>
    %19 = arith.addf %17, %18 : vector<16x1xf32>
    %20 = math.rsqrt %19 : vector<16x1xf32>
    %21 = tpu.concatenate %10, %20 in 1 : vector<16x1xf32>, vector<16x1xf32> -> vector<16x2xf32>
    %c0_11 = arith.constant 0 : index
    %c0_12 = arith.constant 0 : index
    %22 = vector.load %arg9[%c0_11, %c0_12] : memref<64x16xf32, #tpu.memory_space<vmem>>, vector<64x16xf32>
    %cst_13 = arith.constant dense<0.000000e+00> : vector<64x2xf32>
    %23 = tpu.matmul %22, %21, %cst_13 {dimension_numbers = #tpu.dot_dimension_numbers<[1], [0], [0], [1], [0, 0, 1, 1], [], []>} : vector<64x16xf32>, vector<16x2xf32>, vector<64x2xf32> -> vector<64x2xf32>
    %24 = vector.extract_strided_slice %23 {offsets = [0, 1], sizes = [64, 1], strides = [1, 1]} : vector<64x2xf32> to vector<64x1xf32>
    %c0_14 = arith.constant 0 : index
    %c0_15 = arith.constant 0 : index
    %25 = vector.load %arg4[%c0_14, %c0_15] : memref<64x1xf32, #tpu.memory_space<vmem>>, vector<64x1xf32>
    %26 = arith.mulf %24, %25 : vector<64x1xf32>
    %c0_16 = arith.constant 0 : index
    %c0_17 = arith.constant 0 : index
    %27 = vector.load %arg5[%c0_16, %c0_17] : memref<64x1xf32, #tpu.memory_space<vmem>>, vector<64x1xf32>
    %28 = vector.extract_strided_slice %23 {offsets = [0, 0], sizes = [64, 1], strides = [1, 1]} : vector<64x2xf32> to vector<64x1xf32>
    %29 = arith.mulf %28, %26 : vector<64x1xf32>
    %30 = arith.subf %27, %29 : vector<64x1xf32>
    %c0_18 = arith.constant 0 : index
    %c0_19 = arith.constant 0 : index
    %31 = vector.load %arg6[%c0_18, %c0_19] : memref<16x64xbf16, #tpu.memory_space<vmem>>, vector<16x64xbf16>
    %c0_20 = arith.constant 0 : index
    %c0_21 = arith.constant 0 : index
    %32 = vector.load %arg7[%c0_20, %c0_21] : memref<16x1xf32, #tpu.memory_space<vmem>>, vector<16x1xf32>
    %33 = tpu.iota {dimensions = array<i32: 0>} : vector<6x1xi32>
    %c3_i32 = arith.constant 3 : i32
    %34 = vector.broadcast %c3_i32 : i32 to vector<6x1xi32>
    %35 = arith.cmpi slt, %33, %34 : vector<6x1xi32>
    %c0_i32_22 = arith.constant 0 : i32
    %c5_i32_23 = arith.constant 5 : i32
    %36 = arith.addi %c0_i32_22, %c5_i32_23 : i32
    %c1_i32_24 = arith.constant 1 : i32
    scf.for %arg13 = %c0_i32_22 to %36 step %c1_i32_24  : i32 {
      %c512_i32 = arith.constant 512 : i32
      %37 = arith.muli %arg13, %c512_i32 : i32
      %38 = tpu.assume_multiple %37, 128 : i32
      %c0_26 = arith.constant 0 : index
      %39 = arith.index_cast %38 : i32 to index
      %40 = vector.load %arg12[%c0_26, %39] : memref<64x2560xf32, #tpu.memory_space<vmem>>, vector<64x512xf32>
      %41 = vector.broadcast %26 : vector<64x1xf32> to vector<64x512xf32>
      %42 = arith.mulf %40, %41 : vector<64x512xf32>
      %43 = vector.broadcast %30 : vector<64x1xf32> to vector<64x512xf32>
      %44 = arith.addf %42, %43 : vector<64x512xf32>
      %cst_27 = arith.constant 0.000000e+00 : f32
      %45 = vector.broadcast %cst_27 : f32 to vector<64x512xf32>
      %46 = arith.maximumf %44, %45 : vector<64x512xf32>
      %47 = arith.truncf %46 : vector<64x512xf32> to vector<64x512xbf16>
      %cst_28 = arith.constant dense<0.000000e+00> : vector<16x512xf32>
      %48 = tpu.matmul %31, %47, %cst_28 {dimension_numbers = #tpu.dot_dimension_numbers<[1], [0], [0], [1], [0, 0, 1, 1], [], []>} : vector<16x64xbf16>, vector<64x512xbf16>, vector<16x512xf32> -> vector<16x512xf32>
      %49 = vector.broadcast %32 : vector<16x1xf32> to vector<16x512xf32>
      %50 = arith.addf %48, %49 : vector<16x512xf32>
      %51 = vector.extract_strided_slice %50 {offsets = [0, 0], sizes = [6, 512], strides = [1, 1]} : vector<16x512xf32> to vector<6x512xf32>
      %52 = arith.negf %51 : vector<6x512xf32>
      %53 = math.exp %52 : vector<6x512xf32>
      %cst_29 = arith.constant 1.000000e+00 : f32
      %54 = vector.broadcast %cst_29 : f32 to vector<6x512xf32>
      %55 = arith.addf %54, %53 : vector<6x512xf32>
      %56 = arith.divf %54, %55 : vector<6x512xf32>
      %cst_30 = arith.constant 9.99999974E-5 : f32
      %cst_31 = arith.constant 0.999899983 : f32
      %57 = vector.broadcast %cst_30 : f32 to vector<6x512xf32>
      %58 = arith.maximumf %57, %56 : vector<6x512xf32>
      %59 = vector.broadcast %cst_31 : f32 to vector<6x512xf32>
      %60 = arith.minimumf %59, %58 : vector<6x512xf32>
      %cst_32 = arith.constant 5.000000e-01 : f32
      %61 = vector.broadcast %cst_32 : f32 to vector<6x512xf32>
      %62 = arith.subf %56, %61 : vector<6x512xf32>
      %63 = vector.shape_cast %35 : vector<6x1xi1> to vector<6x1xi1>
      %64 = vector.broadcast %63 : vector<6x1xi1> to vector<6x512xi1>
      %65 = arith.select %64, %60, %62 : vector<6x512xi1>, vector<6x512xf32>
      %66 = vector.extract_strided_slice %50 {offsets = [6, 0], sizes = [2, 512], strides = [1, 1]} : vector<16x512xf32> to vector<2x512xf32>
      %67 = arith.mulf %66, %66 : vector<2x512xf32>
      %cst_33 = arith.constant dense<0.000000e+00> : vector<512xf32>
      %68 = vector.multi_reduction <add>, %67, %cst_33 [0] : vector<2x512xf32> to vector<512xf32>
      %69 = vector.shape_cast %68 : vector<512xf32> to vector<1x512xf32>
      %cst_34 = arith.constant 1.000000e-24 : f32
      %70 = vector.broadcast %cst_34 : f32 to vector<1x512xf32>
      %71 = arith.maximumf %69, %70 : vector<1x512xf32>
      %72 = math.rsqrt %71 : vector<1x512xf32>
      %73 = vector.broadcast %72 : vector<1x512xf32> to vector<2x512xf32>
      %74 = arith.mulf %66, %73 : vector<2x512xf32>
      %75 = vector.extract_strided_slice %50 {offsets = [8, 0], sizes = [8, 512], strides = [1, 1]} : vector<16x512xf32> to vector<8x512xf32>
      %76 = tpu.concatenate %65, %74, %75 in 0 : vector<6x512xf32>, vector<2x512xf32>, vector<8x512xf32> -> vector<16x512xf32>
      %c0_35 = arith.constant 0 : index
      %c0_36 = arith.constant 0 : index
      %77 = arith.index_cast %38 : i32 to index
      %78 = vector.load %arg11[%c0_35, %c0_36, %77] : memref<1x16x2560xf32, #tpu.memory_space<vmem>>, vector<1x16x512xf32>
      %79 = vector.shape_cast %78 : vector<1x16x512xf32> to vector<16x512xf32>
      %80 = vector.shape_cast %76 : vector<16x512xf32> to vector<1x16x512xf32>
      tpu.vector_store %arg11[%c0_35, %c0_36, %77], %80 {strides = array<i32>} : memref<1x16x2560xf32, #tpu.memory_space<vmem>>, vector<1x16x512xf32>,
    }
    %c5_i32_25 = arith.constant 5 : i32
    return
  }
  func.func @transform_0(%arg0: i32) -> (i32, i32, i32, i32) {
    %c0_i32 = arith.constant 0 : i32
    %c0_i32_0 = arith.constant 0 : i32
    %c0_i32_1 = arith.constant 0 : i32
    %c0_i32_2 = arith.constant 0 : i32
    return %arg0, %c0_i32, %c0_i32_0, %c0_i32_1 : i32, i32, i32, i32
  }
  func.func @transform_1(%arg0: i32) -> (i32, i32) {
    %c0_i32 = arith.constant 0 : i32
    %c0_i32_0 = arith.constant 0 : i32
    %c0_i32_1 = arith.constant 0 : i32
    return %c0_i32, %c0_i32_0 : i32, i32
  }
  func.func @transform_2(%arg0: i32) -> (i32, i32) {
    %c0_i32 = arith.constant 0 : i32
    %c0_i32_0 = arith.constant 0 : i32
    %c0_i32_1 = arith.constant 0 : i32
    return %c0_i32, %c0_i32_0 : i32, i32
  }
  func.func @transform_3(%arg0: i32) -> (i32, i32) {
    %c0_i32 = arith.constant 0 : i32
    %c0_i32_0 = arith.constant 0 : i32
    %c0_i32_1 = arith.constant 0 : i32
    return %c0_i32, %c0_i32_0 : i32, i32
  }
  func.func @transform_4(%arg0: i32) -> (i32, i32) {
    %c0_i32 = arith.constant 0 : i32
    %c0_i32_0 = arith.constant 0 : i32
    %c0_i32_1 = arith.constant 0 : i32
    return %c0_i32, %c0_i32_0 : i32, i32
  }
  func.func @transform_5(%arg0: i32) -> (i32, i32) {
    %c0_i32 = arith.constant 0 : i32
    %c0_i32_0 = arith.constant 0 : i32
    %c0_i32_1 = arith.constant 0 : i32
    return %c0_i32, %c0_i32_0 : i32, i32
  }
  func.func @transform_6(%arg0: i32) -> (i32, i32) {
    %c0_i32 = arith.constant 0 : i32
    %c0_i32_0 = arith.constant 0 : i32
    %c0_i32_1 = arith.constant 0 : i32
    return %c0_i32, %c0_i32_0 : i32, i32
  }
  func.func @transform_7(%arg0: i32) -> (i32, i32) {
    %c0_i32 = arith.constant 0 : i32
    %c0_i32_0 = arith.constant 0 : i32
    %c0_i32_1 = arith.constant 0 : i32
    return %c0_i32, %c0_i32_0 : i32, i32
  }
  func.func @transform_8(%arg0: i32) -> (i32, i32) {
    %c0_i32 = arith.constant 0 : i32
    %c0_i32_0 = arith.constant 0 : i32
    %c0_i32_1 = arith.constant 0 : i32
    return %c0_i32, %c0_i32_0 : i32, i32
  }
  func.func @transform_9(%arg0: i32) -> (i32, i32) {
    %c0_i32 = arith.constant 0 : i32
    %c0_i32_0 = arith.constant 0 : i32
    %c0_i32_1 = arith.constant 0 : i32
    return %c0_i32, %c0_i32_0 : i32, i32
  }
  func.func @transform_10(%arg0: i32) -> (i32, i32, i32) {
    %c0_i32 = arith.constant 0 : i32
    %c0_i32_0 = arith.constant 0 : i32
    %c0_i32_1 = arith.constant 0 : i32
    return %arg0, %c0_i32, %c0_i32_0 : i32, i32, i32
  }
}

</mosaic_0001>

<bundles_post_ra>
// kernel: smoke_head_forward.1
= control target key start
LH: loop header
LB: loop body
LE: loop exit
PB: predicated region body
PF: predicated region fallthrough
CT: control target
= control target key end

     0   :  { %s2715_s13 = smov 0   ;;  %s3500_s0 = inlined_call_operand.vmem [shape: bf16[2,3,16,2816], index: 0, kind: input, shape index: {}]   ;;  %s3501_s1 = inlined_call_operand.vmem [shape: bf16[64,144], index: 1, kind: input, shape index: {}]   ;;  %s3502_s2 = inlined_call_operand.vmem [shape: f32[64,1], index: 2, kind: input, shape index: {}]   ;;  %s3503_s3 = inlined_call_operand.vmem [shape: f32[64,1], index: 3, kind: input, shape index: {}]   ;;  %s3504_s4 = inlined_call_operand.vmem [shape: f32[64,1], index: 4, kind: input, shape index: {}]   ;;  %s3505_s5 = inlined_call_operand.vmem [shape: bf16[16,64], index: 5, kind: input, shape index: {}]   ;;  %s3506_s6 = inlined_call_operand.vmem [shape: f32[16,1], index: 6, kind: input, shape index: {}]   ;;  %s3507_s7 = inlined_call_operand.vmem [shape: f32[16,64], index: 7, kind: input, shape index: {}]   ;;  %s3508_s8 = inlined_call_operand.vmem [shape: f32[64,16], index: 8, kind: input, shape index: {}]   ;;  %s3509_s9 = inlined_call_operand.vmem [shape: f32[1,2560], index: 9, kind: input, shape index: {}]   ;;  %s3510_s10 = inlined_call_operand.vmem [shape: f32[2,16,2560], index: 10, kind: output, shape index: {}]  }
   0x1 LB: > { %s2055_s14 = sadd.s32 4294967295, %s2581_s13   ;;  %p2059_p0 = scmp.ge.s32.totalorder %s2581_s13, 1  ;;  %s2581_s13 = sphi %s2715_s13, %s20_s13  }
   0x2   : > { %p312_p1 = scmp.lt.s32.totalorder %s2581_s13, 3 }
   0x4   : > { %p313_p2 = pnand %p2059_p0, %p312_p1 }
   0x6   : > { %316 = sbr.rel (%p313_p2) target bundleno = 1613 (0x64d), region = 60 }
   0xd   : > { %p350_p3 = scmp.lt.s32.totalorder %s2055_s14, 1  ;;  %v2726_v0 = vld [vmem:[%s3501_s1] sm:$0xff]  ;;  %v2731_v1 = vld [vmem:[%s3501_s1 + $0x8] sm:$0xff]  ;;  %v2736_v2 = vld [vmem:[%s3501_s1 + $0x10] sm:$0xff]  ;;  %v2813_v16 = vmov 0.0   ;;  %v2815_v17 = vmov 0.0  }
   0xe   : > { %3522 = vst [vmem:[#allocation3_spill] sm:$0xff] %v2726_v0  ;;  %3523 = vst [vmem:[#allocation4_spill] sm:$0xff] %v2731_v1  ;;  %v2741_v3 = vld [vmem:[%s3501_s1 + $0x18] sm:$0xff]  ;;  %v2746_v4 = vld [vmem:[%s3501_s1 + $0x20] sm:$0xff]  ;;  %v2817_v18 = vmov 0.0   ;;  %v2819_v19 = vmov 0.0  }
   0xf   : > { %3524 = vst [vmem:[#allocation5_spill] sm:$0xff] %v2736_v2  ;;  %3525 = vst [vmem:[#allocation6_spill] sm:$0xff] %v2741_v3  ;;  %v2751_v5 = vld [vmem:[%s3501_s1 + $0x28] sm:$0xff]  ;;  %s3578_s14 = smov (!%p350_p3, %s2055_s14), 1  ;;  %v2756_v6 = vld [vmem:[%s3501_s1 + $0x30] sm:$0xff]  ;;  %v2821_v20 = vmov 0.0  }
  0x10   : > { %3526 = vst [vmem:[#allocation7_spill] sm:$0xff] %v2746_v4  ;;  %3527 = vst [vmem:[#allocation8_spill] sm:$0xff] %v2751_v5  ;;  %v2761_v7 = vld [vmem:[%s3501_s1 + $0x38] sm:$0xff]  ;;  %v2766_v8 = vld [vmem:[%s3502_s2] sm:$0xff]  ;;  %s2250_s21 = smul.u32 528, %s3578_s14  ;;  %v2823_v21 = vmov 0.0  }
  0x11   : > { %3528 = vst [vmem:[#allocation9_spill] sm:$0xff] %v2756_v6  ;;  %3529 = vst [vmem:[#allocation10_spill] sm:$0xff] %v2761_v7  ;;  %v2771_v9 = vld [vmem:[%s3502_s2 + $0x8] sm:$0xff]  ;;  %v2776_v10 = vld [vmem:[%s3502_s2 + $0x10] sm:$0xff]  ;;  %s2251_s28 = smul.u32 320, %s3578_s14  ;;  %v2825_v22 = vmov 0.0  }
  0x12   : > { %3530 = vst [vmem:[#allocation11_spill] sm:$0xff] %v2766_v8  ;;  %3531 = vst [vmem:[#allocation12_spill] sm:$0xff] %v2771_v9  ;;  %v2781_v11 = vld [vmem:[%s3502_s2 + $0x18] sm:$0xff]  ;;  %v2786_v12 = vld [vmem:[%s3502_s2 + $0x20] sm:$0xff]  ;;  %s2806_s15 = scalar_lea.vmem %s3500_s0, %s2250_s21  ;;  %v2827_v23 = vmov 0.0   ;;  %v2829_v24 = vmov 0.0  }
  0x13   : > { %3532 = vst [vmem:[#allocation13_spill] sm:$0xff] %v2776_v10  ;;  %3533 = vst [vmem:[#allocation14_spill] sm:$0xff] %v2781_v11  ;;  %v2791_v13 = vld [vmem:[%s3502_s2 + $0x28] sm:$0xff]  ;;  %v2796_v14 = vld [vmem:[%s3502_s2 + $0x30] sm:$0xff]  ;;  %s2811_s18 = scalar_lea.vmem %s3510_s10, %s2251_s28  ;;  %v2831_v25 = vmov 0.0   ;;  %v2833_v26 = vmov 0.0  }
  0x14   : > { %v2801_v15 = vld [vmem:[%s3502_s2 + $0x38] sm:$0xff]  ;;  %v2835_v27 = vmov 0.0   ;;  %v2837_v28 = vmov 0.0   ;;  %v2839_v29 = vmov 0.0   ;;  %v2841_v30 = vmov 0.0   ;;  %s2845_s14 = smov 0  }
  0x15   : > { %v2843_v31 = vmov 0.0  }
  0x16 LB: >> { %v3538_v3 = vld [vmem:[#allocation6_spill] sm:$0xff]  ;;  %v3539_v2 = vld [vmem:[#allocation5_spill] sm:$0xff]  ;;  %v3540_v1 = vld [vmem:[#allocation4_spill] sm:$0xff]  ;;  %vm724_vm0 = vcmask 130048   ;;  %s2901_s19 = sshll.u32 %s2649_s14, 9  ;;  %v2655_v33 = vmov 0   ;;  %v2613_v23 = vphi %v2827_v23, %v3554_v23   ;;  %v2609_v22 = vphi %v2825_v22, %v3553_v22   ;;  %v2605_v21 = vphi %v2823_v21, %v3552_v21   ;;  %v2601_v20 = vphi %v2821_v20, %v3551_v20   ;;  %v2597_v19 = vphi %v2819_v19, %v3550_v19   ;;  %v2593_v18 = vphi %v2817_v18, %v3549_v18   ;;  %v2589_v17 = vphi %v2815_v17, %v3548_v17   ;;  %v2585_v16 = vphi %v2813_v16, %v3547_v16   ;;  %s2649_s14 = sphi %s2845_s14, %s382_s14   ;;  %v2645_v31 = vphi %v2843_v31, %v3562_v31   ;;  %v2641_v30 = vphi %v2841_v30, %v3561_v30   ;;  %v2637_v29 = vphi %v2839_v29, %v3560_v29   ;;  %v2633_v28 = vphi %v2837_v28, %v3559_v28   ;;  %v2629_v27 = vphi %v2835_v27, %v3558_v27   ;;  %v2625_v26 = vphi %v2833_v26, %v3557_v26   ;;  %v2621_v25 = vphi %v2831_v25, %v3556_v25   ;;  %v2617_v24 = vphi %v2829_v24, %v3555_v24  }
  0x17   : >> { %v3536_v5 = vld [vmem:[#allocation8_spill] sm:$0xff]  ;;  %v3537_v4 = vld [vmem:[#allocation7_spill] sm:$0xff]  ;;  %s2906_s20 = sshra.s32 %s2901_s19, 7  ;;  %s422_s21 = sadd.s32 128, %s2901_s19  ;;  %2409 = vset.pattern.permute.xlu0 %v2655_v33  ;;  %2410 = vset.pattern.permute.xlu1 %v2655_v33 }
  0x18   : >> { %v3534_v7 = vld [vmem:[#allocation10_spill] sm:$0xff]  ;;  %v3535_v6 = vld [vmem:[#allocation9_spill] sm:$0xff]  ;;  %v3541_v0 = vld [vmem:[#allocation3_spill] sm:$0xff]  ;;  %s2063_s22 = sshll.u32 %s2906_s20, 2  ;;  %s423_s24 = sshra.s32 %s422_s21, 7 }
  0x19   : >> { %v2133_v32 = vcombine.high %v3541_v0, %v3540_v1  ;;  %v3542_v8 = vld [vmem:[#allocation11_spill] sm:$0xff]  ;;  %s403_s23 = scalar_lea.vmem %s2806_s15, %s2063_s22  ;;  %s2074_s25 = sshll.u32 %s423_s24, 2  ;;  %v3544_v9 = vld [vmem:[#allocation12_spill] sm:$0xff] }
  0x1a   : >> { %650 = vperm.xlu0 %2409, %v3542_v8   ;;  %v3543_v10 = vld [vmem:[#allocation13_spill] sm:$0xff]  ;;  %v2411_v34 = vld [vmem:[%s403_s23 + $0x4] ss:$88 sps:$4 sm:$0xff]   ;;  %v2415_v36 = vld [vmem:[%s403_s23] ss:$88 sps:$4 sm:$0xff]   ;;  %s2916_s26 = scalar_lea.vmem %s2806_s15, %s2074_s25  ;;  %s445_s27 = sadd.s32 256, %s2901_s19 }
  0x1b   : >> { %2140 = vmatprep.mubr.msk.bf16.mxu0 %vm724_vm0, %v2133_v32  ;;  %2144 = vmatprep.mubr.msk.bf16.mxu1 %vm724_vm0, %v2133_v32  ;;  %v2413_v35 = vld [vmem:[%s403_s23 + $0xc] ss:$88 sps:$4 sm:$0xff]   ;;  %v2416_v37 = vld [vmem:[%s403_s23 + $0x8] ss:$88 sps:$4 sm:$0xff]   ;;  %v3545_v11 = vld [vmem:[#allocation14_spill] sm:$0xff]  ;;  %s446_s28 = sshra.s32 %s445_s27, 7  ;;  %s885_s16 = scalar_lea.vmem %s3509_s9, %s2906_s20 }
  0x1c   : >> { %660 = vperm.xlu1 %2410, %v3543_v10   ;;  %737 = vmatprep.subr.bf16.mxu0 %v2411_v34  ;;  %v2417_v38 = vld [vmem:[%s403_s23 + $0xb4] ss:$88 sps:$4 sm:$0xff]   ;;  %v2421_v40 = vld [vmem:[%s403_s23 + $0xb0] ss:$88 sps:$4 sm:$0xff]   ;;  %v2423_v42 = vld [vmem:[%s403_s23 + $0x164] ss:$88 sps:$4 sm:$0xff]  }
  0x1d   : >> { %810 = vmatprep.subr.bf16.mxu1 %v2413_v35  ;;  %738 = vmatpush1.bf16.msra.mxu0 %v2415_v36  ;;  %v2419_v39 = vld [vmem:[%s403_s23 + $0xbc] ss:$88 sps:$4 sm:$0xff]   ;;  %v2422_v41 = vld [vmem:[%s403_s23 + $0xb8] ss:$88 sps:$4 sm:$0xff]   ;;  %v2425_v43 = vld [vmem:[%s403_s23 + $0x16c] ss:$88 sps:$4 sm:$0xff]  }
  0x1e   : >> { %655 = vperm.xlu0 %2409, %v3544_v9   ;;  %811 = vmatpush1.bf16.msra.mxu1 %v2416_v37  ;;  %v2427_v44 = vld [vmem:[%s403_s23 + $0x160] ss:$88 sps:$4 sm:$0xff]   ;;  %v2429_v46 = vld [vmem:[%s2916_s26 + $0x4] ss:$88 sps:$4 sm:$0xff]   ;;  %v2435_v50 = vld [vmem:[%s2916_s26 + $0xb4] ss:$88 sps:$4 sm:$0xff]  }
  0x1f   : >> { %739 = vmatprep.subr.bf16.mxu0 %v2417_v38  ;;  %812 = vmatprep.subr.bf16.mxu1 %v2419_v39  ;;  %v2428_v45 = vld [vmem:[%s403_s23 + $0x168] ss:$88 sps:$4 sm:$0xff]   ;;  %v2431_v47 = vld [vmem:[%s2916_s26 + $0xc] ss:$88 sps:$4 sm:$0xff]   ;;  %s2085_s29 = sshll.u32 %s446_s28, 2  ;;  %v2132_v38 = vcombine.low %v3541_v0, %v3540_v1  ;;  %v2135_v39 = vcombine.high %v3539_v2, %v3538_v3  ;;  %s2148_s17 = sshll.u32 %s2906_s20, 3 }
  0x20   : >> { %665 = vperm.xlu1 %2410, %v3545_v11   ;;  %v2433_v48 = vld [vmem:[%s2916_s26] ss:$88 sps:$4 sm:$0xff]   ;;  %v2437_v51 = vld [vmem:[%s2916_s26 + $0xbc] ss:$88 sps:$4 sm:$0xff]   ;;  %v2439_v52 = vld [vmem:[%s2916_s26 + $0xb0] ss:$88 sps:$4 sm:$0xff]   ;;  %s2932_s30 = scalar_lea.vmem %s2806_s15, %s2085_s29 }
  0x21   : >> { %740 = vmatpush1.bf16.msra.mxu0 %v2421_v40  ;;  %v2434_v49 = vld [vmem:[%s2916_s26 + $0x8] ss:$88 sps:$4 sm:$0xff]   ;;  %v2440_v53 = vld [vmem:[%s2916_s26 + $0xb8] ss:$88 sps:$4 sm:$0xff]   ;;  %v2441_v54 = vld [vmem:[%s2916_s26 + $0x164] ss:$88 sps:$4 sm:$0xff]   ;;  %v2134_v40 = vcombine.low %v3539_v2, %v3538_v3 }
  0x22   : >> { %670 = vperm.xlu0 %2409, %v2786_v12   ;;  %813 = vmatpush1.bf16.msra.mxu1 %v2422_v41  ;;  %v2443_v55 = vld [vmem:[%s2916_s26 + $0x16c] ss:$88 sps:$4 sm:$0xff]   ;;  %v2445_v56 = vld [vmem:[%s2916_s26 + $0x160] ss:$88 sps:$4 sm:$0xff]   ;;  %v2455_v63 = vld [vmem:[%s2932_s30 + $0xbc] ss:$88 sps:$4 sm:$0xff]   ;;  %v2137_v41 = vcombine.high %v3537_v4, %v3536_v5 }
  0x23   : >> { %741 = vmatprep.subr.bf16.mxu0 %v2423_v42  ;;  %814 = vmatprep.subr.bf16.mxu1 %v2425_v43  ;;  %v2446_v57 = vld [vmem:[%s2916_s26 + $0x168] ss:$88 sps:$4 sm:$0xff]   ;;  %v2447_v58 = vld [vmem:[%s2932_s30 + $0x4] ss:$88 sps:$4 sm:$0xff]   ;;  %v2453_v62 = vld [vmem:[%s2932_s30 + $0xb4] ss:$88 sps:$4 sm:$0xff]   ;;  %v2136_v42 = vcombine.low %v3537_v4, %v3536_v5  ;;  %v2139_v43 = vcombine.high %v3535_v6, %v3534_v7 }
  0x24   : >> { %675 = vperm.xlu1 %2410, %v2791_v13   ;;  %v2449_v59 = vld [vmem:[%s2932_s30 + $0xc] ss:$88 sps:$4 sm:$0xff]   ;;  %v2451_v60 = vld [vmem:[%s2932_s30] ss:$88 sps:$4 sm:$0xff]   ;;  %v2457_v32 = vld [vmem:[%s2932_s30 + $0xb0] ss:$88 sps:$4 sm:$0xff]  }
  0x25   : >> { %742 = vmatpush1.bf16.msra.mxu0 %v2427_v44  ;;  %v2452_v61 = vld [vmem:[%s2932_s30 + $0x8] ss:$88 sps:$4 sm:$0xff]   ;;  %v2458_v33 = vld [vmem:[%s2932_s30 + $0xb8] ss:$88 sps:$4 sm:$0xff]   ;;  %v2459_v34 = vld [vmem:[%s2932_s30 + $0x164] ss:$88 sps:$4 sm:$0xff]   ;;  %v2138_v44 = vcombine.low %v3535_v6, %v3534_v7 }
  0x26   : >> { %680 = vperm.xlu0 %2409, %v2796_v14   ;;  %815 = vmatpush1.bf16.msra.mxu1 %v2428_v45  ;;  %v2461_v35 = vld [vmem:[%s2932_s30 + $0x16c] ss:$88 sps:$4 sm:$0xff]   ;;  %v2463_v36 = vld [vmem:[%s2932_s30 + $0x160] ss:$88 sps:$4 sm:$0xff]   ;;  %v888_v45 = vlaneseq  ;;  %s2990_s19 = scalar_lea.vmem [#allocation2], %s2148_s17  ;;  %s382_s14 = sadd.s32 1, %s2649_s14  }
  0x27   : >> { %743 = vmatprep.subr.bf16.mxu0 %v2429_v46  ;;  %816 = vmatprep.subr.bf16.mxu1 %v2431_v47  ;;  %v2464_v37 = vld [vmem:[%s2932_s30 + $0x168] ss:$88 sps:$4 sm:$0xff]   ;;  %p3121_p4 = scmp.ge.s32.totalorder %s382_s14, 5  }
  0x28   : >> { %685 = vperm.xlu1 %2410, %v2801_v15   ;;  %v2970_v46 = vshrl.u32 %v888_v45, 7  ;;  %vm1102_vm1 = vcmask (%p3121_p4), 7168   ;;  %vm1113_vm2 = vcmask (%p3121_p4), 523264   ;;  %s2656_s23 = smov (%p3121_p4), 1   ;;  %s2657_s22 = smov (%p3121_p4), 127  }
  0x29   : >> { %744 = vmatpush1.bf16.msra.mxu0 %v2433_v48  ;;  %s3352_s27 = smov (%p3121_p4), 0  }
  0x2a   : >> { %817 = vmatpush1.bf16.msra.mxu1 %v2434_v49  ;;  %745 = vmatprep.subr.bf16.mxu0 %v2435_v50  ;;  %v890_v48 = vsub.s32 0, %v2970_v46  ;;  %v898_v49 = vsub.s32 2, %v2970_v46  ;;  %v886_v50 = vld [vmem:[%s885_s16] sm:$0xf]  ;;  %vm1465_vm3 = vcmp.lt.s32.totalorder (%p3121_p4), %v2970_v46, 3 }
  0x2b   : >> { %818 = vmatprep.subr.bf16.mxu1 %v2437_v51  ;;  %v894_v51 = vsub.s32 1, %v2970_v46 }
  0x2d   : >> { %746 = vmatpush1.bf16.msra.mxu0 %v2439_v52  ;;  %v902_v52 = vsub.s32 3, %v2970_v46 }
  0x2e   : >> { %819 = vmatpush1.bf16.msra.mxu1 %v2440_v53  ;;  %747 = vmatprep.subr.bf16.mxu0 %v2441_v54 }
  0x2f   : >> { %820 = vmatprep.subr.bf16.mxu1 %v2443_v55  ;;  %v2981_v55 = vrot.slane %v886_v50, %v890_v48 }
  0x31   : >> { %748 = vmatpush1.bf16.msra.mxu0 %v2445_v56  ;;  %v2983_v56 = vrot.slane %v886_v50, %v898_v49 }
  0x32   : >> { %821 = vmatpush1.bf16.msra.mxu1 %v2446_v57  ;;  %749 = vmatprep.subr.bf16.mxu0 %v2447_v58 }
  0x33   : >> { %822 = vmatprep.subr.bf16.mxu1 %v2449_v59  ;;  %v2985_v59 = vrot.slane %v886_v50, %v894_v51 }
  0x35   : >> { %750 = vmatpush1.bf16.msra.mxu0 %v2451_v60  ;;  %v2987_v60 = vrot.slane %v886_v50, %v902_v52 }
  0x36   : >> { %823 = vmatpush1.bf16.msra.mxu1 %v2452_v61  ;;  %751 = vmatprep.subr.bf16.mxu0 %v2453_v62 }
  0x37   : >> { %824 = vmatprep.subr.bf16.mxu1 %v2455_v63 }
  0x39   : >> { %752 = vmatpush1.bf16.msra.mxu0 %v2457_v32 }
  0x3a   : >> { %825 = vmatpush1.bf16.msra.mxu1 %v2458_v33  ;;  %753 = vmatprep.subr.bf16.mxu0 %v2459_v34 }
  0x3b   : >> { %826 = vmatprep.subr.bf16.mxu1 %v2461_v35 }
  0x3d   : >> { %754 = vmatpush1.bf16.msra.mxu0 %v2463_v36 }
  0x3e   : >> { %827 = vmatpush1.bf16.msra.mxu1 %v2464_v37 }
  0x40   : >> { %770 = vmatmul.mubr.bf16.vlgmr.msra.gmra.mrb[0].mxu0 %v2132_v38 }
  0x41   : >> { %843 = vmatmul.mubr.bf16.vlgmr.msra.gmra.mrb[0].mxu1 %v2132_v38  ;;  %2141 = vmatprep.mubr.msk.bf16.mxu0 %vm724_vm0, %v2135_v39 }
  0x42   : >> { %2145 = vmatprep.mubr.msk.bf16.mxu1 %vm724_vm0, %v2135_v39 }
  0x48   : >> { %780 = vmatmul.mubr.bf16.gmra.mrb[4].mxu0 %v2134_v40 }
  0x49   : >> { %853 = vmatmul.mubr.bf16.gmra.mrb[4].mxu1 %v2134_v40  ;;  %2142 = vmatprep.mubr.msk.bf16.mxu0 %vm724_vm0, %v2137_v41 }
  0x4a   : >> { %2146 = vmatprep.mubr.msk.bf16.mxu1 %vm724_vm0, %v2137_v41 }
  0x50   : >> { %790 = vmatmul.mubr.bf16.gmra.mrb[8].mxu0 %v2136_v42 }
  0x51   : >> { %863 = vmatmul.mubr.bf16.gmra.mrb[8].mxu1 %v2136_v42  ;;  %2143 = vmatprep.mubr.msk.bf16.mxu0 %vm724_vm0, %v2139_v43 }
  0x52   : >> { %2147 = vmatprep.mubr.msk.bf16.mxu1 %vm724_vm0, %v2139_v43 }
  0x58   : >> { %800 = vmatmul.mubr.bf16.gmra.mrb[12].mxu0 %v2138_v44 }
  0x59   : >> { %873 = vmatmul.mubr.bf16.gmra.mrb[12].mxu1 %v2138_v44 }
  0x99   : >> { %v651_v47 = vpop.permute.xlu0 %650 }
  0x9b   : >> { %v661_v54 = vpop.permute.xlu1 %660 }
  0x9d   : >> { %v656_v53 = vpop.permute.xlu0 %655 }
 0x113   : >> { %v771_v57 = vpop.f32.mrb[0].mxu0 }
 0x114   : >> { %v844_v58 = vpop.f32.mrb[0].mxu1  ;;  %v772_v61 = vadd.f32 %v771_v57, %v651_v47  ;;  %v773_v63 = vpop.f32.mrb[1].mxu0 }
 0x115   : >> { %v845_v62 = vadd.f32 %v844_v58, %v651_v47  ;;  %v846_v32 = vpop.f32.mrb[1].mxu1  ;;  %v774_v33 = vadd.f32 %v773_v63, %v651_v47  ;;  %v775_v35 = vpop.f32.mrb[2].mxu0 }
 0x116   : >> { %v847_v34 = vadd.f32 %v846_v32, %v651_v47  ;;  %v848_v36 = vpop.f32.mrb[2].mxu1  ;;  %v908_v37 = vmul.f32 %v2981_v55, %v772_v61  ;;  %1070 = vst [vmem:[%s2990_s19] sm:$0xff] %v772_v61  ;;  %v776_v39 = vadd.f32 %v775_v35, %v656_v53  ;;  %v777_v41 = vpop.f32.mrb[3].mxu0 }
 0x117   : >> { %v910_v38 = vmul.f32 %v2983_v56, %v845_v62  ;;  %1072 = vst [vmem:[%s2990_s19 + $0x10] sm:$0xff] %v845_v62  ;;  %v849_v40 = vadd.f32 %v848_v36, %v656_v53  ;;  %v850_v42 = vpop.f32.mrb[3].mxu1  ;;  %v909_v43 = vmul.f32 %v2985_v59, %v774_v33  ;;  %1071 = vst [vmem:[%s2990_s19 + $0x8] sm:$0xff] %v774_v33  ;;  %v666_v63 = vpop.permute.xlu1 %665 }
 0x118   : >> { %1073 = vst [vmem:[%s2990_s19 + $0x18] sm:$0xff] %v847_v34  ;;  %v778_v44 = vadd.f32 %v777_v41, %v656_v53  ;;  %v851_v45 = vadd.f32 %v850_v42, %v656_v53  ;;  %v911_v47 = vmul.f32 %v2987_v60, %v847_v34  ;;  %v988_v48 = vmul.f32 %v908_v37, %v772_v61 }
 0x119   : >> { %v912_v49 = vmul.f32 %v2981_v55, %v776_v39  ;;  %1074 = vst [vmem:[%s2990_s19 + $0xa0] sm:$0xff] %v776_v39  ;;  %v914_v50 = vmul.f32 %v2983_v56, %v849_v40  ;;  %1076 = vst [vmem:[%s2990_s19 + $0xb0] sm:$0xff] %v849_v40  ;;  %v989_v51 = vmul.f32 %v909_v43, %v774_v33 }
 0x11a   : >> { %v913_v52 = vmul.f32 %v2985_v59, %v778_v44  ;;  %1075 = vst [vmem:[%s2990_s19 + $0xa8] sm:$0xff] %v778_v44  ;;  %1077 = vst [vmem:[%s2990_s19 + $0xb8] sm:$0xff] %v851_v45  ;;  %v940_v57 = vadd.f32 %v909_v43, %v908_v37  ;;  %v990_v58 = vmul.f32 %v910_v38, %v845_v62 }
 0x11b   : >> { %v992_v32 = vmul.f32 %v912_v49, %v776_v39  ;;  %v915_v53 = vmul.f32 %v2987_v60, %v851_v45  ;;  %v994_v35 = vmul.f32 %v914_v50, %v849_v40  ;;  %v781_v36 = vpop.f32.mrb[4].mxu0  ;;  %v991_v0 = vmul.f32 %v911_v47, %v847_v34 }
 0x11c   : >> { %v854_v61 = vpop.f32.mrb[4].mxu1  ;;  %v941_v41 = vadd.f32 %v940_v57, %v910_v38  ;;  %v945_v42 = vadd.f32 %v913_v52, %v912_v49  ;;  %v993_v1 = vmul.f32 %v913_v52, %v778_v44  ;;  %v782_v33 = vadd.f32 %v781_v36, %v661_v54  ;;  %v783_v3 = vpop.f32.mrb[5].mxu0 }
 0x11d   : >> { %v855_v2 = vadd.f32 %v854_v61, %v661_v54  ;;  %v856_v4 = vpop.f32.mrb[5].mxu1  ;;  %v1020_v5 = vadd.f32 %v989_v51, %v988_v48  ;;  %v784_v62 = vadd.f32 %v783_v3, %v661_v54  ;;  %v785_v39 = vpop.f32.mrb[6].mxu0  ;;  %v995_v36 = vmul.f32 %v915_v53, %v851_v45 }
 0x11e   : >> { %v857_v37 = vadd.f32 %v856_v4, %v661_v54  ;;  %v858_v43 = vpop.f32.mrb[6].mxu1  ;;  %v942_v40 = vadd.f32 %v941_v41, %v911_v47  ;;  %v946_v6 = vadd.f32 %v945_v42, %v914_v50  ;;  %v916_v38 = vmul.f32 %v2981_v55, %v782_v33  ;;  %1078 = vst [vmem:[%s2990_s19 + $0x140] sm:$0xff] %v782_v33  ;;  %v787_v52 = vpop.f32.mrb[7].mxu0 }
 0x11f   : >> { %v918_v34 = vmul.f32 %v2983_v56, %v855_v2  ;;  %1080 = vst [vmem:[%s2990_s19 + $0x150] sm:$0xff] %v855_v2  ;;  %v786_v44 = vadd.f32 %v785_v39, %v666_v63  ;;  %v859_v49 = vadd.f32 %v858_v43, %v666_v63  ;;  %v860_v48 = vpop.f32.mrb[7].mxu1  ;;  %v917_v3 = vmul.f32 %v2985_v59, %v784_v62  ;;  %v671_v39 = vpop.permute.xlu0 %670 }
 0x120   : >> { %1079 = vst [vmem:[%s2990_s19 + $0x148] sm:$0xff] %v784_v62  ;;  %1081 = vst [vmem:[%s2990_s19 + $0x158] sm:$0xff] %v857_v37  ;;  %v788_v4 = vadd.f32 %v787_v52, %v666_v63  ;;  %v3014_v54 = vadd.f32 %v860_v48, %v666_v63  ;;  %943 = vadd.xlane.f32.xlu0 %v942_v40  ;;  %v947_v47 = vadd.f32 %v946_v6, %v915_v53  ;;  %v676_v6 = vpop.permute.xlu1 %675 }
 0x121   : >> { %v996_v50 = vmul.f32 %v916_v38, %v782_v33  ;;  %v3017_v51 = vmul.f32 %v2981_v55, %v786_v44  ;;  %1082 = vst [vmem:[%s2990_s19 + $0x1e0] sm:$0xff] %v786_v44  ;;  %v3021_v57 = vmul.f32 %v2983_v56, %v859_v49  ;;  %1084 = vst [vmem:[%s2990_s19 + $0x1f0] sm:$0xff] %v859_v49 }
 0x122   : >> { %v998_v61 = vmul.f32 %v918_v34, %v855_v2  ;;  %v997_v41 = vmul.f32 %v917_v3, %v784_v62  ;;  %1083 = vst [vmem:[%s2990_s19 + $0x1e8] sm:$0xff] %v788_v4  ;;  %1085 = vst [vmem:[%s2990_s19 + $0x1f8] sm:$0xff] %v3014_v54  ;;  %948 = vadd.xlane.f32.xlu1 %v947_v47  ;;  %v1025_v63 = vadd.f32 %v993_v1, %v992_v32 }
 0x123   : >> { %v1021_v42 = vadd.f32 %v1020_v5, %v990_v58  ;;  %v3028_v33 = vmul.f32 %v3017_v51, %v786_v44  ;;  %v921_v43 = vmul.f32 %v2985_v59, %v788_v4  ;;  %v919_v40 = vmul.f32 %v2987_v60, %v857_v37  ;;  %v791_v2 = vpop.f32.mrb[8].mxu0 }
 0x124   : >> { %v950_v52 = vadd.f32 %v917_v3, %v916_v38  ;;  %v3033_v45 = vmul.f32 %v3021_v57, %v859_v49  ;;  %v864_v53 = vpop.f32.mrb[8].mxu1  ;;  %v1026_v62 = vadd.f32 %v1025_v63, %v994_v35  ;;  %v1030_v1 = vadd.f32 %v997_v41, %v996_v50  ;;  %v793_v32 = vpop.f32.mrb[9].mxu0 }
 0x125   : >> { %v1022_v48 = vadd.f32 %v1021_v42, %v991_v0  ;;  %v792_v5 = vadd.f32 %v791_v2, %v671_v39  ;;  %v865_v58 = vadd.f32 %v864_v53, %v671_v39  ;;  %v866_v44 = vpop.f32.mrb[9].mxu1  ;;  %v999_v7 = vmul.f32 %v919_v40, %v857_v37  ;;  %v795_v49 = vpop.f32.mrb[10].mxu0 }
 0x126   : >> { %v951_v47 = vadd.f32 %v950_v52, %v918_v34  ;;  %v1027_v8 = vadd.f32 %v1026_v62, %v995_v36  ;;  %v794_v9 = vadd.f32 %v793_v32, %v671_v39  ;;  %v3035_v38 = vadd.f32 %v866_v44, %v671_v39  ;;  %v868_v3 = vpop.f32.mrb[10].mxu1  ;;  %v797_v34 = vpop.f32.mrb[11].mxu0 }
 0x127   : >> { %1023 = vadd.xlane.f32.xlu1 %v1022_v48  ;;  %v1031_v35 = vadd.f32 %v1030_v1, %v998_v61  ;;  %v924_v0 = vmul.f32 %v2981_v55, %v792_v5  ;;  %1086 = vst [vmem:[%s2990_s19 + $0x280] sm:$0xff] %v792_v5  ;;  %v926_v50 = vmul.f32 %v2983_v56, %v865_v58  ;;  %1088 = vst [vmem:[%s2990_s19 + $0x290] sm:$0xff] %v865_v58  ;;  %v870_v36 = vpop.f32.mrb[11].mxu1  ;;  %v686_v1 = vpop.permute.xlu1 %685 }
 0x128   : >> { %v796_v41 = vadd.f32 %v795_v49, %v676_v6  ;;  %v869_v37 = vadd.f32 %v868_v3, %v676_v6  ;;  %1028 = vadd.xlane.f32.xlu0 %v1027_v8  ;;  %v925_v63 = vmul.f32 %v2985_v59, %v794_v9  ;;  %1087 = vst [vmem:[%s2990_s19 + $0x288] sm:$0xff] %v794_v9  ;;  %1089 = vst [vmem:[%s2990_s19 + $0x298] sm:$0xff] %v3035_v38 }
 0x129   : >> { %v798_v61 = vadd.f32 %v797_v34, %v676_v6  ;;  %v3045_v42 = vadd.f32 %v870_v36, %v676_v6  ;;  %v952_v39 = vadd.f32 %v951_v47, %v919_v40  ;;  %v1001_v52 = vmul.f32 %v921_v43, %v788_v4  ;;  %v681_v40 = vpop.permute.xlu0 %680 }
 0x12a   : >> { %v3047_v2 = vmul.f32 %v924_v0, %v792_v5  ;;  %v3050_v53 = vmul.f32 %v2981_v55, %v796_v41  ;;  %1090 = vst [vmem:[%s2990_s19 + $0x320] sm:$0xff] %v796_v41  ;;  %v3054_v62 = vmul.f32 %v2983_v56, %v869_v37  ;;  %1092 = vst [vmem:[%s2990_s19 + $0x330] sm:$0xff] %v869_v37 }
 0x12b   : >> { %v3057_v8 = vmul.f32 %v926_v50, %v865_v58  ;;  %v929_v48 = vmul.f32 %v2985_v59, %v798_v61  ;;  %1091 = vst [vmem:[%s2990_s19 + $0x328] sm:$0xff] %v798_v61  ;;  %1093 = vst [vmem:[%s2990_s19 + $0x338] sm:$0xff] %v3045_v42  ;;  %v1032_v6 = vadd.f32 %v1031_v35, %v999_v7  ;;  %v801_v49 = vpop.f32.mrb[12].mxu0 }
 0x12c   : >> { %v923_v4 = vmul.f32 %v2987_v60, %v3014_v54  ;;  %v1005_v5 = vmul.f32 %v925_v63, %v794_v9  ;;  %v3066_v32 = vmul.f32 %v3050_v53, %v796_v41  ;;  %v3069_v44 = vmul.f32 %v3054_v62, %v869_v37  ;;  %953 = vadd.xlane.f32.xlu0 %v952_v39  ;;  %v874_v3 = vpop.f32.mrb[12].mxu1  ;;  %v803_v36 = vpop.f32.mrb[13].mxu0 }
 0x12d   : >> { %v955_v58 = vadd.f32 %v921_v43, %v3017_v51  ;;  %v1009_v47 = vmul.f32 %v929_v48, %v798_v61  ;;  %1033 = vadd.xlane.f32.xlu1 %v1032_v6  ;;  %v927_v7 = vmul.f32 %v2987_v60, %v3035_v38  ;;  %v960_v35 = vadd.f32 %v925_v63, %v924_v0  ;;  %v876_v37 = vpop.f32.mrb[13].mxu1  ;;  %v805_v61 = vpop.f32.mrb[14].mxu0 }
 0x12e   : >> { %v802_v9 = vadd.f32 %v801_v49, %v681_v40  ;;  %v875_v34 = vadd.f32 %v874_v3, %v681_v40  ;;  %v1035_v10 = vadd.f32 %v1001_v52, %v3028_v33  ;;  %v804_v51 = vadd.f32 %v803_v36, %v681_v40  ;;  %v878_v39 = vpop.f32.mrb[14].mxu1  ;;  %v807_v49 = vpop.f32.mrb[15].mxu0 }
 0x12f   : >> { %v956_v41 = vadd.f32 %v955_v58, %v3021_v57  ;;  %v877_v43 = vadd.f32 %v876_v37, %v681_v40  ;;  %v961_v6 = vadd.f32 %v960_v35, %v926_v50  ;;  %v1003_v11 = vmul.f32 %v923_v4, %v3014_v54  ;;  %v880_v33 = vpop.f32.mrb[15].mxu1 }
 0x130   : >> { %v932_v0 = vmul.f32 %v2981_v55, %v802_v9  ;;  %1094 = vst [vmem:[%s2990_s19 + $0x3c0] sm:$0xff] %v802_v9  ;;  %v934_v63 = vmul.f32 %v2983_v56, %v875_v34  ;;  %1096 = vst [vmem:[%s2990_s19 + $0x3d0] sm:$0xff] %v875_v34  ;;  %v806_v58 = vadd.f32 %v805_v61, %v686_v1 }
 0x131   : >> { %v957_v57 = vadd.f32 %v956_v41, %v923_v4  ;;  %v933_v52 = vmul.f32 %v2985_v59, %v804_v51  ;;  %1095 = vst [vmem:[%s2990_s19 + $0x3c8] sm:$0xff] %v804_v51  ;;  %1097 = vst [vmem:[%s2990_s19 + $0x3d8] sm:$0xff] %v877_v43  ;;  %v879_v50 = vadd.f32 %v878_v39, %v686_v1 }
 0x132   : >> { %v808_v54 = vadd.f32 %v807_v49, %v686_v1  ;;  %v881_v40 = vadd.f32 %v880_v33, %v686_v1  ;;  %v1012_v3 = vmul.f32 %v932_v0, %v802_v9  ;;  %v936_v35 = vmul.f32 %v2981_v55, %v806_v58  ;;  %1098 = vst [vmem:[%s2990_s19 + $0x460] sm:$0xff] %v806_v58 }
 0x133   : >> { %958 = vadd.xlane.f32.xlu0 %v957_v57  ;;  %v962_v36 = vadd.f32 %v961_v6, %v927_v7  ;;  %v1007_v4 = vmul.f32 %v927_v7, %v3035_v38  ;;  %v1013_v41 = vmul.f32 %v933_v52, %v804_v51  ;;  %v938_v37 = vmul.f32 %v2983_v56, %v879_v50 }
 0x134   : >> { %1100 = vst [vmem:[%s2990_s19 + $0x470] sm:$0xff] %v879_v50  ;;  %v937_v61 = vmul.f32 %v2985_v59, %v808_v54  ;;  %1099 = vst [vmem:[%s2990_s19 + $0x468] sm:$0xff] %v808_v54  ;;  %v1036_v39 = vadd.f32 %v1035_v10, %v3033_v45  ;;  %v1014_v49 = vmul.f32 %v934_v63, %v875_v34 }
 0x135   : >> { %1101 = vst [vmem:[%s2990_s19 + $0x478] sm:$0xff] %v881_v40  ;;  %963 = vadd.xlane.f32.xlu1 %v962_v36  ;;  %v1040_v1 = vadd.f32 %v1005_v5, %v3047_v2  ;;  %v931_v55 = vmul.f32 %v2987_v60, %v3045_v42  ;;  %v965_v9 = vadd.f32 %v929_v48, %v3050_v53 }
 0x136   : >> { %v1016_v38 = vmul.f32 %v936_v35, %v806_v58  ;;  %v1017_v7 = vmul.f32 %v937_v61, %v808_v54  ;;  %v1037_v51 = vadd.f32 %v1036_v39, %v1003_v11  ;;  %v935_v56 = vmul.f32 %v2987_v60, %v877_v43 }
 0x137   : >> { %v1018_v6 = vmul.f32 %v938_v37, %v879_v50  ;;  %v1041_v59 = vadd.f32 %v1040_v1, %v3057_v8  ;;  %v966_v57 = vadd.f32 %v965_v9, %v3054_v62  ;;  %v970_v10 = vadd.f32 %v933_v52, %v932_v0 }
 0x138   : >> { %1038 = vadd.xlane.f32.xlu0 %v1037_v51  ;;  %v1011_v45 = vmul.f32 %v931_v55, %v3045_v42  ;;  %v1045_v2 = vadd.f32 %v1009_v47, %v3066_v32  ;;  %v1050_v5 = vadd.f32 %v1013_v41, %v1012_v3  ;;  %v939_v34 = vmul.f32 %v2987_v60, %v881_v40 }
 0x139   : >> { %v1042_v53 = vadd.f32 %v1041_v59, %v1007_v4  ;;  %v967_v48 = vadd.f32 %v966_v57, %v931_v55  ;;  %v971_v58 = vadd.f32 %v970_v10, %v934_v63  ;;  %v975_v11 = vadd.f32 %v937_v61, %v936_v35 }
 0x13a   : >> { %v1046_v33 = vadd.f32 %v1045_v2, %v3069_v44  ;;  %v1015_v50 = vmul.f32 %v935_v56, %v877_v43  ;;  %v1051_v54 = vadd.f32 %v1050_v5, %v1014_v49  ;;  %v1055_v8 = vadd.f32 %v1017_v7, %v1016_v38  ;;  %v1111_v2 = vld [vmem:[%s3507_s7] sm:$0xff] (%p3121_p4) }
 0x13b   : >> { %1043 = vadd.xlane.f32.xlu1 %v1042_v53  ;;  %v972_v62 = vadd.f32 %v971_v58, %v935_v56  ;;  %v976_v0 = vadd.f32 %v975_v11, %v938_v37  ;;  %v1019_v36 = vmul.f32 %v939_v34, %v881_v40  ;;  %2211 = vmatprep.mubr.msk.f32.mxu0 (%p3121_p4), %vm1113_vm2, %v1111_v2  ;;  %v3251_v2 = vld [vmem:[%s3505_s5 + $0x4] sm:$0xf] (%p3121_p4) }
 0x13c   : >> { %968 = vadd.xlane.f32.xlu0 %v967_v48  ;;  %v1047_v52 = vadd.f32 %v1046_v33, %v1011_v45  ;;  %v1052_v42 = vadd.f32 %v1051_v54, %v1015_v50  ;;  %v1056_v32 = vadd.f32 %v1055_v8, %v1018_v6  ;;  %v1217_v50 = vld [vmem:[%s3508_s8] sm:$0xff] (%p3121_p4)  ;;  %v1357_v8 = vld [vmem:[%s3503_s3 + $0x10] sm:$0xff] (%p3121_p4) }
 0x13d   : >> { %v977_v47 = vadd.f32 %v976_v0, %v939_v34  ;;  %2218 = vmatprep.mubr.msk.f32.mxu1 (%p3121_p4), %vm724_vm0, %v1217_v50  ;;  %v1355_v54 = vld [vmem:[%s3503_s3] sm:$0xff] (%p3121_p4) }
 0x13e   : >> { %v1057_v3 = vadd.f32 %v1056_v32, %v1019_v36  ;;  %v1359_v0 = vld [vmem:[%s3503_s3 + $0x20] sm:$0xff] (%p3121_p4)  ;;  %v1360_v36 = vld [vmem:[%s3503_s3 + $0x28] sm:$0xff] (%p3121_p4)  ;;  %v1362_v32 = vld [vmem:[%s3503_s3 + $0x38] sm:$0xff] (%p3121_p4) }
 0x13f   : >> { %973 = vadd.xlane.f32.xlu1 %v972_v62  ;;  %v1356_v62 = vld [vmem:[%s3503_s3 + $0x8] sm:$0xff] (%p3121_p4) }
 0x140   : >> { %1048 = vadd.xlane.f32.xlu0 %v1047_v52  ;;  %v1358_v52 = vld [vmem:[%s3503_s3 + $0x18] sm:$0xff] (%p3121_p4) }
 0x143   : >> { %1053 = vadd.xlane.f32.xlu1 %v1052_v42  ;;  %v1361_v42 = vld [vmem:[%s3503_s3 + $0x30] sm:$0xff] (%p3121_p4) }
 0x144   : >> { %978 = vadd.xlane.f32.xlu0 %v977_v47 }
 0x148   : >> { %1058 = vadd.xlane.f32.xlu0 %v1057_v3 }
 0x154   : > { %1371 = vrot.lane.b32.xlu1 (%p3121_p4), %v1355_v54, %s2656_s23 }
 0x158   : > { %1373 = vrot.lane.b32.xlu1 (%p3121_p4), %v1356_v62, %s2656_s23 }
 0x15c   : > { %1377 = vrot.lane.b32.xlu1 (%p3121_p4), %v1358_v52, %s2656_s23  ;;  %v3308_v52 = vld [vmem:[%s3504_s4 + $0x10] sm:$0xff] (%p3121_p4) }
 0x160   : > { %1381 = vrot.lane.b32.xlu1 (%p3121_p4), %v1360_v36, %s2656_s23 }
 0x164   : > { %1385 = vrot.lane.b32.xlu1 (%p3121_p4), %v1362_v32, %s2656_s23 }
 0x1ad   : >> { %v944_v60 = vpop.xlane.xlu0 %943 }
 0x1ae   : >> { %v980_v44 = vadd.f32 %v2645_v31, %v944_v60  }
 0x1af   : >> { %v949_v43 = vpop.xlane.xlu1 %948 }
 0x1b0   : >> { %v981_v63 = vadd.f32 %v2641_v30, %v949_v43  }
 0x1b4   : >> { %v1024_v35 = vpop.xlane.xlu1 %1023 }
 0x1b5   : >> { %v1060_v4 = vadd.f32 %v2613_v23, %v1024_v35   ;;  %v1029_v41 = vpop.xlane.xlu0 %1028 }
 0x1b6   : >> { %v1061_v40 = vadd.f32 %v2609_v22, %v1029_v41  }
 0x1b7   : > { %v1103_v5 = vsel (%p3121_p4), %vm1102_vm1, %v980_v44, %v1060_v4 }
 0x1b8   : > { %v1104_v34 = vsel (%p3121_p4), %vm1102_vm1, %v981_v63, %v1061_v40 }
 0x1b9   : >> { %v954_v37 = vpop.xlane.xlu0 %953  ;;  %v2230_v58 = vpack.c.bf16 (%p3121_p4), %v1104_v34, %v1103_v5  ;;  %v3256_v5 = vld [vmem:[%s3506_s6] sm:$0xff] (%p3121_p4) }
 0x1ba   : >> { %v1034_v61 = vpop.xlane.xlu1 %1033  ;;  %v982_v39 = vadd.f32 %v2637_v29, %v954_v37  }
 0x1bb   : >> { %v1062_v49 = vadd.f32 %v2605_v21, %v1034_v61   ;;  %2231 = vmatprep.subr.bf16.mxu0 (%p3121_p4), %v2230_v58 }
 0x1bc   : > { %2233 = vmatpush3.bf16.msra.mxu0 (%p3121_p4), %v2230_v58 }
 0x1bd   : > { %v1105_v53 = vsel (%p3121_p4), %vm1102_vm1, %v982_v39, %v1062_v49 }
 0x1c0   : >> { %v959_v1 = vpop.xlane.xlu0 %958 }
 0x1c1   : >> { %v983_v55 = vadd.f32 %v2633_v28, %v959_v1   ;;  %v1219_v1 = vld [vmem:[%s3508_s8 + $0x10] sm:$0xff] (%p3121_p4) }
 0x1c2   : >> { %v964_v9 = vpop.xlane.xlu1 %963 }
 0x1c3   : >> { %v984_v38 = vadd.f32 %v2629_v27, %v964_v9   ;;  %v1221_v9 = vld [vmem:[%s3508_s8 + $0x20] sm:$0xff] (%p3121_p4) }
 0x1c5   : >> { %v1039_v31 = vpop.xlane.xlu0 %1038 }
 0x1c6   : >> { %v1063_v7 = vadd.f32 %v2601_v20, %v1039_v31   ;;  %v3562_v31 = vmov %v980_v44 }
 0x1c7   : > { %v1223_v31 = vld [vmem:[%s3508_s8 + $0x30] sm:$0xff] (%p3121_p4) }
 0x1c8   : >> { %v1044_v30 = vpop.xlane.xlu1 %1043  ;;  %v3551_v20 = vmov %v1063_v7  ;;  %v1106_v48 = vsel (%p3121_p4), %vm1102_vm1, %v983_v55, %v1063_v7  ;;  %v1224_v7 = vld [vmem:[%s3508_s8 + $0x38] sm:$0xff] (%p3121_p4) }
 0x1c9   : >> { %v1064_v51 = vadd.f32 %v2597_v19, %v1044_v30   ;;  %v969_v23 = vpop.xlane.xlu0 %968  ;;  %v3561_v30 = vmov %v981_v63  ;;  %v2234_v11 = vpack.c.bf16 (%p3121_p4), %v1106_v48, %v1105_v53  ;;  %v3263_v53 = vld [vmem:[%s3506_s6 + $0x8] sm:$0xff] (%p3121_p4) }
 0x1ca   : >> { %v985_v56 = vadd.f32 %v2625_v26, %v969_v23   ;;  %v3554_v23 = vmov %v1060_v4 }
 0x1cb   : >> { %v3550_v19 = vmov %v1064_v51  ;;  %v1107_v33 = vsel (%p3121_p4), %vm1102_vm1, %v984_v38, %v1064_v51  ;;  %2235 = vmatprep.subr.bf16.mxu0 (%p3121_p4), %v2234_v11 }
 0x1cc   : >> { %v974_v22 = vpop.xlane.xlu1 %973  ;;  %v3557_v26 = vmov %v985_v56  ;;  %2237 = vmatpush3.bf16.msra.mxu0 (%p3121_p4), %v2234_v11 }
 0x1cd   : >> { %v986_v6 = vadd.f32 %v2621_v25, %v974_v22   ;;  %v1049_v29 = vpop.xlane.xlu0 %1048  ;;  %v3553_v22 = vmov %v1061_v40 }
 0x1ce   : >> { %v1065_v59 = vadd.f32 %v2593_v18, %v1049_v29   ;;  %v3560_v29 = vmov %v982_v39 }
 0x1cf   : >> { %v3556_v25 = vmov %v986_v6 }
 0x1d0   : >> { %v1054_v21 = vpop.xlane.xlu1 %1053  ;;  %v3549_v18 = vmov %v1065_v59  ;;  %v1108_v12 = vsel (%p3121_p4), %vm1102_vm1, %v985_v56, %v1065_v59 }
 0x1d1   : >> { %v1066_v57 = vadd.f32 %v2589_v17, %v1054_v21   ;;  %v979_v28 = vpop.xlane.xlu0 %978  ;;  %v3552_v21 = vmov %v1062_v49  ;;  %v2238_v13 = vpack.c.bf16 (%p3121_p4), %v1108_v12, %v1107_v33  ;;  %v1218_v49 = vld [vmem:[%s3508_s8 + $0x8] sm:$0xff] (%p3121_p4) }
 0x1d2   : >> { %v987_v10 = vadd.f32 %v2617_v24, %v979_v28   ;;  %v3559_v28 = vmov %v983_v55  ;;  %381 = sbr.rel (!%p3121_p4) target bundleno = 22 (0x16), region = 117  ;;  %v1220_v55 = vld [vmem:[%s3508_s8 + $0x18] sm:$0xff] (%p3121_p4) }
 0x1d3   : >> { %v3548_v17 = vmov %v1066_v57  ;;  %v1109_v14 = vsel (%p3121_p4), %vm1102_vm1, %v986_v6, %v1066_v57  ;;  %2239 = vmatprep.subr.bf16.mxu0 (%p3121_p4), %v2238_v13 }
 0x1d4   : >> { %v3555_v24 = vmov %v987_v10  ;;  %2241 = vmatpush3.bf16.msra.mxu0 (%p3121_p4), %v2238_v13  ;;  %v1112_v17 = vld [vmem:[%s3507_s7 + $0x8] sm:$0xff] (%p3121_p4)  ;;  %v1372_v30 = vpop.permute.xlu1 (%p3121_p4), %1371 }
 0x1d5   : >> { %v1059_v27 = vpop.xlane.xlu0 %1058 }
 0x1d6   : >> { %v1067_v45 = vadd.f32 %v2585_v16, %v1059_v27   ;;  %v3558_v27 = vmov %v984_v38  ;;  %v1222_v38 = vld [vmem:[%s3508_s8 + $0x28] sm:$0xff] (%p3121_p4) }
 0x1d8   : >> { %v3547_v16 = vmov %v1067_v45  ;;  %v1110_v15 = vsel (%p3121_p4), %vm1102_vm1, %v987_v10, %v1067_v45  ;;  %v1374_v51 = vpop.permute.xlu1 (%p3121_p4), %1373  ;;  %v3246_v45 = vld [vmem:[%s3505_s5] sm:$0xf] (%p3121_p4) }
 0x1d9   : > { %v2242_v16 = vpack.c.bf16 %v1110_v15, %v1109_v14 }
 0x1db   : > { %2243 = vmatprep.subr.bf16.mxu0 %v2242_v16 }
 0x1dc   : > { %2245 = vmatpush3.bf16.msra.mxu0 %v2242_v16  ;;  %v1378_v23 = vpop.permute.xlu1 %1377 }
 0x1df   : > { %2212 = vmatmul.mubr.msk.f32.vlgmr.msra.gmra.mrb[0].mxu0 %vm1113_vm2, %v1112_v17 }
 0x1e0   : > { %v1382_v57 = vpop.permute.xlu1 %1381 }
 0x1e4   : > { %v1386_v12 = vpop.permute.xlu1 %1385 }
 0x2b2   : > { %v2213_v18 = vpop.f32.mrb[0].mxu0 }
 0x2b3   : > { %v1186_v19 = vpop.f32.mrb[1].mxu0  ;;  %v1196_v24 = vmul.f32 0.0009765625, %v2213_v18  ;;  %v3283_v18 = vld [vmem:[%s3504_s4 + $0x8] sm:$0xff] }
 0x2b4   : > { %v1195_v20 = vmul.f32 0.0009765625, %v1186_v19 }
 0x2b5   : > { %v1198_v26 = vmul.f32 %v1196_v24, %v1196_v24 }
 0x2b6   : > { %v1197_v25 = vmul.f32 %v1195_v20, %v1195_v20 }
 0x2b8   : > { %1201 = vrot.lane.b32.xlu0 %v1197_v25, %s2656_s23 }
 0x2bc   : > { %1203 = vrot.lane.b32.xlu0 %v1198_v26, %s2656_s23 }
 0x2c0   : > { %1375 = vrot.lane.b32.xlu0 %v1357_v8, %s2656_s23  ;;  %v3301_v8 = vld [vmem:[%s3504_s4 + $0x18] sm:$0xff] }
 0x2c4   : > { %1379 = vrot.lane.b32.xlu0 %v1359_v0, %s2656_s23 }
 0x2c8   : > { %1383 = vrot.lane.b32.xlu0 %v1361_v42, %s2656_s23 }
 0x32a   : > { %v1202_v47 = vpop.permute.xlu0 %1201 }
 0x32b   : > { %v1207_v3 = vsub.f32 %v1195_v20, %v1202_v47 }
 0x32d   : > { %v1209_v60 = vmax.f32 %v1207_v3, 0.0  ;;  %v3319_v3 = vld [vmem:[%s3504_s4 + $0x28] sm:$0xff] }
 0x32e   : > { %v1204_v44 = vpop.permute.xlu0 %1203  ;;  %3564 = vst [vmem:[#allocation16_spill] sm:$0xff] %v3319_v3 }
 0x32f   : > { %v1211_v43 = vadd.f32 1e-05, %v1209_v60  ;;  %v1208_v63 = vsub.f32 %v1196_v24, %v1204_v44 }
 0x331   : > { %v1210_v35 = vmax.f32 %v1208_v63, 0.0  ;;  %2465 = vrsqrt.f32 %v1211_v43  ;;  %v3326_v43 = vld [vmem:[%s3504_s4 + $0x20] sm:$0xff] }
 0x332   : > { %v1376_v56 = vpop.permute.xlu0 %1375 }
 0x333   : > { %v1212_v4 = vadd.f32 1e-05, %v1210_v35 }
 0x335   : > { %2467 = vrsqrt.f32 %v1212_v4 }
 0x336   : > { %v1380_v27 = vpop.permute.xlu0 %1379 }
 0x33a   : > { %v1384_v13 = vpop.permute.xlu0 %1383 }
 0x33b   : > { %v2466_v41 = vpop.eup %2465 }
 0x33c   : > { %v1215_v37 = vsel %vm1102_vm1, %v1195_v20, %v2466_v41 }
 0x33f   : > { %v2468_v40 = vpop.eup %2467 }
 0x340   : > { %v1216_v61 = vsel %vm1102_vm1, %v1196_v24, %v2468_v40  ;;  %v3290_v24 = vld [vmem:[%s3504_s4] sm:$0xff]  ;;  %v3337_v40 = vld [vmem:[%s3504_s4 + $0x38] sm:$0xff] }
 0x341   : > { %v2246_v39 = vpack.c.bf16 %v1216_v61, %v1215_v37 }
 0x343   : > { %2247 = vmatprep.subr.bf16.mxu1 %v2246_v39 }
 0x344   : > { %2249 = vmatpush3.bf16.msra.mxu1 %v2246_v39  ;;  %v3344_v39 = vld [vmem:[%s3504_s4 + $0x30] sm:$0xff] }
 0x347   : > { %2219 = vmatmul.mubr.msk.f32.vlgmr.msra.gmra.mrb[0].mxu1 %vm724_vm0, %v1218_v49 }
 0x348   : > { %2221 = vmatprep.mubr.msk.f32.mxu1 %vm724_vm0, %v1219_v1 }
 0x34b   : > { %2222 = vmatmul.mubr.msk.f32.gmra.mrb[2].mxu1 %vm724_vm0, %v1220_v55 }
 0x34c   : > { %2224 = vmatprep.mubr.msk.f32.mxu1 %vm724_vm0, %v1221_v9 }
 0x34f   : > { %2225 = vmatmul.mubr.msk.f32.gmra.mrb[4].mxu1 %vm724_vm0, %v1222_v38 }
 0x350   : > { %2227 = vmatprep.mubr.msk.f32.mxu1 %vm724_vm0, %v1223_v31 }
 0x353   : > { %2228 = vmatmul.mubr.msk.f32.gmra.mrb[6].mxu1 %vm724_vm0, %v1224_v7 }
 0x41a   : > { %v2220_v22 = vpop.f32.mrb[0].mxu1 }
 0x41b   : > { %v3235_v6 = vmul.f32 %v2220_v22, %v1374_v51  ;;  %v1316_v29 = vpop.f32.mrb[1].mxu1 }
 0x41c   : > { %v3237_v59 = vmul.f32 %v1372_v30, %v1316_v29 }
 0x41d   : > { %1421 = vrot.lane.b32.xlu1 %v3235_v6, %s2657_s22 }
 0x41e   : > { %1419 = vrot.lane.b32.xlu0 %v3237_v59, %s2657_s22  ;;  %v2223_v21 = vpop.f32.mrb[2].mxu1 }
 0x41f   : > { %v3241_v28 = vmul.f32 %v2223_v21, %v1378_v23  ;;  %v1326_v10 = vpop.f32.mrb[3].mxu1 }
 0x420   : > { %v3258_v34 = vmul.f32 %v1376_v56, %v1326_v10 }
 0x421   : > { %1425 = vrot.lane.b32.xlu1 %v3241_v28, %s2657_s22 }
 0x422   : > { %v2226_v48 = vpop.f32.mrb[4].mxu1  ;;  %1423 = vrot.lane.b32.xlu0 %v3258_v34, %s2657_s22 }
 0x423   : > { %v3268_v58 = vmul.f32 %v2226_v48, %v1382_v57  ;;  %v1336_v11 = vpop.f32.mrb[5].mxu1 }
 0x424   : > { %v3270_v33 = vmul.f32 %v1380_v27, %v1336_v11 }
 0x425   : > { %1429 = vrot.lane.b32.xlu1 %v3268_v58, %s2657_s22 }
 0x426   : > { %v2229_v14 = vpop.f32.mrb[6].mxu1  ;;  %1427 = vrot.lane.b32.xlu0 %v3270_v33, %s2657_s22 }
 0x427   : > { %v3274_v15 = vmul.f32 %v2229_v14, %v1386_v12  ;;  %v1346_v16 = vpop.f32.mrb[7].mxu1 }
 0x428   : > { %v3276_v17 = vmul.f32 %v1384_v13, %v1346_v16 }
 0x429   : > { %1433 = vrot.lane.b32.xlu1 %v3274_v15, %s2657_s22 }
 0x42a   : > { %1431 = vrot.lane.b32.xlu0 %v3276_v17, %s2657_s22 }
 0x48f   : > { %v1422_v19 = vpop.permute.xlu1 %1421 }
 0x490   : > { %v3285_v20 = vmul.f32 %v2220_v22, %v1422_v19  ;;  %v1420_v25 = vpop.permute.xlu0 %1419 }
 0x491   : > { %v3292_v26 = vmul.f32 %v1420_v25, %v1316_v29 }
 0x493   : > { %v1426_v62 = vpop.permute.xlu1 %1425 }
 0x494   : > { %v3303_v0 = vmul.f32 %v2223_v21, %v1426_v62  ;;  %v1424_v42 = vpop.permute.xlu0 %1423 }
 0x495   : > { %v3310_v36 = vmul.f32 %v1424_v42, %v1326_v10 }
 0x496   : > { %3563 = vst [vmem:[#allocation15_spill] sm:$0xff] %v3303_v0 }
 0x497   : > { %v1430_v60 = vpop.permute.xlu1 %1429 }
 0x498   : > { %v3321_v44 = vmul.f32 %v2226_v48, %v1430_v60  ;;  %v1428_v63 = vpop.permute.xlu0 %1427 }
 0x499   : > { %v3328_v35 = vmul.f32 %v1428_v63, %v1336_v11 }
 0x49b   : > { %v1434_v37 = vpop.permute.xlu1 %1433 }
 0x49c   : > { %v3339_v61 = vmul.f32 %v2229_v14, %v1434_v37  ;;  %v1432_v49 = vpop.permute.xlu0 %1431 }
 0x49d   : > { %v3346_v1 = vmul.f32 %v1432_v49, %v1346_v16 }
 0x49f   : > { %3565 = vst [vmem:[#allocation17_spill] sm:$0xff] %v3346_v1 }
 0x4a0 LB: >> { %v2658_v38 = vmov 0   ;;  %v3566_v47 = vsub.f32 %v3308_v52, %v3310_v36  ;;  %v3567_v54 = vsub.f32 %v3290_v24, %v3292_v26  ;;  %v3568_v50 = vsub.f32 %v3283_v18, %v3285_v20  ;;  %v3569_v0 = vld [vmem:[#allocation15_spill] sm:$0xff]  ;;  %v3574_v3 = vld [vmem:[#allocation16_spill] sm:$0xff]  ;;  %s2159_s28 = sshll.u32 %s2653_s27, 9  ;;  %s1471_s27 = sadd.s32 1, %s2653_s27   ;;  %s2653_s27 = sphi %s3352_s27, %s1471_s27  }
 0x4a1   : >> { %2471 = vset.pattern.permute.xlu0 %v2658_v38  ;;  %2469 = vset.pattern.permute.xlu1 %v2658_v38  ;;  %v2659_v31 = vmov 1   ;;  %v3570_v32 = vsub.f32 %v3301_v8, %v3569_v0  ;;  %v3571_v41 = vsub.f32 %v3326_v43, %v3328_v35  ;;  %v3575_v4 = vsub.f32 %v3574_v3, %v3321_v44  ;;  %s3392_s29 = sshra.s32 %s2159_s28, 7  ;;  %p1468_p5 = scmp.ge.s32.totalorder %s1471_s27, 5  }
 0x4a2   : >> { %1585 = vperm.xlu0 %2471, %v3566_v47   ;;  %1575 = vperm.xlu1 %2469, %v3567_v54   ;;  %v3576_v55 = vsub.f32 %v3337_v40, %v3339_v61  ;;  %s2160_s30 = sshll.u32 %s3392_s29, 3  ;;  %vm1855_vm4 = vcmask 1041408   ;;  %vm1896_vm5 = vcmask 1045504  }
 0x4a3   : >> { %1743 = vmatprep.mubr.bf16.mxu0 %v2658_v38  ;;  %1786 = vmatprep.mubr.bf16.mxu1 %v2658_v38  ;;  %s3399_s11 = scalar_lea.vmem [#allocation2], %s2160_s30  ;;  %s3458_s12 = scalar_lea.vmem %s2811_s18, %s2160_s30 }
 0x4a4   : >> { %v1478_v23 = vld [vmem:[%s3399_s11 + $0x8] sm:$0xff]  ;;  %v1477_v22 = vld [vmem:[%s3399_s11] sm:$0xff]  ;;  %v1480_v29 = vld [vmem:[%s3399_s11 + $0x18] sm:$0xff] }
 0x4a5   : >> { %v1479_v21 = vld [vmem:[%s3399_s11 + $0x10] sm:$0xff]  ;;  %v1481_v57 = vld [vmem:[%s3399_s11 + $0xa0] sm:$0xff]  ;;  %v1482_v11 = vld [vmem:[%s3399_s11 + $0xa8] sm:$0xff] }
 0x4a6   : >> { %1580 = vperm.xlu1 %2469, %v3568_v50   ;;  %2472 = vset.pattern.permute.xlu0 %v2659_v31  ;;  %v3572_v1 = vld [vmem:[#allocation17_spill] sm:$0xff]  ;;  %v1484_v16 = vld [vmem:[%s3399_s11 + $0xb8] sm:$0xff]  ;;  %v1490_v42 = vld [vmem:[%s3399_s11 + $0x1e8] sm:$0xff] }
 0x4a7   : >> { %1510 = vperm.xlu0 %2472, %v3237_v59   ;;  %v3573_v9 = vsub.f32 %v3344_v39, %v3572_v1  ;;  %v1483_v10 = vld [vmem:[%s3399_s11 + $0xb0] sm:$0xff]  ;;  %v1492_v60 = vld [vmem:[%s3399_s11 + $0x1f8] sm:$0xff]  ;;  %v1489_v63 = vld [vmem:[%s3399_s11 + $0x1e0] sm:$0xff] }
 0x4a8   : >> { %v1486_v37 = vld [vmem:[%s3399_s11 + $0x148] sm:$0xff]  ;;  %v1488_v49 = vld [vmem:[%s3399_s11 + $0x158] sm:$0xff] }
 0x4aa   : >> { %2470 = vset.pattern.permute.xlu1 %v2659_v31 }
 0x4ab   : >> { %1514 = vperm.xlu0 %2472, %v3235_v6   ;;  %1522 = vperm.xlu1 %2470, %v3241_v28  }
 0x4af   : >> { %1518 = vperm.xlu0 %2472, %v3258_v34   ;;  %2473 = vset.pattern.permute.xlu1 %v2658_v38 }
 0x4b0   : >> { %1590 = vperm.xlu1 %2473, %v3570_v32  }
 0x4b3   : >> { %1530 = vperm.xlu0 %2472, %v3268_v58  }
 0x4b4   : >> { %2474 = vset.pattern.permute.xlu1 %v2659_v31 }
 0x4b5   : >> { %1526 = vperm.xlu1 %2474, %v3270_v33  }
 0x4b7   : >> { %1534 = vperm.xlu0 %2472, %v3276_v17  }
 0x4b9   : >> { %2475 = vset.pattern.permute.xlu1 %v2658_v38 }
 0x4ba   : >> { %1595 = vperm.xlu1 %2475, %v3571_v41  }
 0x4bb   : >> { %2477 = vset.pattern.permute.xlu0 %v2658_v38 }
 0x4bc   : >> { %1605 = vperm.xlu0 %2477, %v3573_v9  }
 0x4be   : >> { %1600 = vperm.xlu1 %2475, %v3575_v4   ;;  %v1491_v4 = vld [vmem:[%s3399_s11 + $0x1f0] sm:$0xff] }
 0x4c0   : >> { %1700 = vperm.xlu0 %2477, %v3263_v53  }
 0x4c2   : >> { %2476 = vset.pattern.permute.xlu1 %v2659_v31 }
 0x4c3   : >> { %1538 = vperm.xlu1 %2476, %v3274_v15  }
 0x4c7   : >> { %2478 = vset.pattern.permute.xlu1 %v2658_v38 }
 0x4c8   : >> { %1610 = vperm.xlu1 %2478, %v3576_v55  }
 0x4cc   : >> { %1695 = vperm.xlu1 %2478, %v3256_v5  }
 0x521   : >> { %v1576_v7 = vpop.permute.xlu1 %1575  ;;  %v3395_v30 = vpop.permute.xlu0 %1585 }
 0x525   : >> { %v1581_v51 = vpop.permute.xlu1 %1580 }
 0x526   : >> { %v1511_v56 = vpop.permute.xlu0 %1510 }
 0x527   : >> { %v1542_v27 = vmul.f32 %v1511_v56, %v1478_v23  ;;  %v1541_v48 = vmul.f32 %v1511_v56, %v1477_v22  ;;  %v1544_v12 = vmul.f32 %v1511_v56, %v1480_v29  ;;  %v1543_v19 = vmul.f32 %v1511_v56, %v1479_v21 }
 0x529   : >> { %v1614_v31 = vadd.f32 %v1576_v7, %v1542_v27  ;;  %v1616_v22 = vadd.f32 %v1576_v7, %v1544_v12  ;;  %v1613_v9 = vadd.f32 %v1576_v7, %v1541_v48  ;;  %v1615_v0 = vadd.f32 %v1576_v7, %v1543_v19  ;;  %v1494_v19 = vld [vmem:[%s3399_s11 + $0x288] sm:$0xff] }
 0x52a   : >> { %v1515_v13 = vpop.permute.xlu0 %1514  ;;  %v1523_v14 = vpop.permute.xlu1 %1522 }
 0x52b   : >> { %v1545_v25 = vmul.f32 %v1515_v13, %v1481_v57  ;;  %v1547_v62 = vmul.f32 %v1515_v13, %v1483_v10  ;;  %v1546_v38 = vmul.f32 %v1515_v13, %v1482_v11  ;;  %v1548_v23 = vmul.f32 %v1515_v13, %v1484_v16  ;;  %v1485_v57 = vld [vmem:[%s3399_s11 + $0x140] sm:$0xff] }
 0x52c   : >> { %v1554_v29 = vmul.f32 %v1523_v14, %v1490_v42  ;;  %v1556_v41 = vmul.f32 %v1523_v14, %v1492_v60  ;;  %v1553_v21 = vmul.f32 %v1523_v14, %v1489_v63  ;;  %v1555_v1 = vmul.f32 %v1523_v14, %v1491_v4 }
 0x52d   : >> { %v1617_v32 = vadd.f32 %v1581_v51, %v1545_v25  ;;  %v1618_v50 = vadd.f32 %v1581_v51, %v1546_v38  ;;  %v1619_v56 = vadd.f32 %v1581_v51, %v1547_v62  ;;  %v1646_v3 = vmax.f32 %v1614_v31, 0.0  ;;  %v1487_v25 = vld [vmem:[%s3399_s11 + $0x150] sm:$0xff] }
 0x52e   : >> { %v1519_v47 = vpop.permute.xlu0 %1518  ;;  %v1620_v48 = vadd.f32 %v1581_v51, %v1548_v23  ;;  %v1645_v60 = vmax.f32 %v1613_v9, 0.0  ;;  %v1647_v4 = vmax.f32 %v1615_v0, 0.0  ;;  %v1493_v51 = vld [vmem:[%s3399_s11 + $0x280] sm:$0xff]  ;;  %v1496_v0 = vld [vmem:[%s3399_s11 + $0x298] sm:$0xff] }
 0x52f   : >> { %v1550_v10 = vmul.f32 %v1519_v47, %v1486_v37  ;;  %v1552_v54 = vmul.f32 %v1519_v47, %v1488_v49  ;;  %v1591_v55 = vpop.permute.xlu1 %1590  ;;  %v1650_v13 = vmax.f32 %v1618_v50, 0.0  ;;  %v1649_v12 = vmax.f32 %v1617_v32, 0.0 }
 0x530   : >> { %v1626_v11 = vadd.f32 %v1591_v55, %v1554_v29  ;;  %v1628_v27 = vadd.f32 %v1591_v55, %v1556_v41  ;;  %v1651_v16 = vmax.f32 %v1619_v56, 0.0  ;;  %v1549_v42 = vmul.f32 %v1519_v47, %v1485_v57 }
 0x531   : >> { %v1622_v62 = vadd.f32 %v3395_v30, %v1550_v10  ;;  %v1624_v63 = vadd.f32 %v3395_v30, %v1552_v54  ;;  %v1625_v37 = vadd.f32 %v1591_v55, %v1553_v21  ;;  %v1648_v49 = vmax.f32 %v1616_v22, 0.0  ;;  %v1495_v22 = vld [vmem:[%s3399_s11 + $0x290] sm:$0xff] }
 0x532   : >> { %v1658_v41 = vmax.f32 %v1626_v11, 0.0  ;;  %v1678_v7 = vpack.c.bf16 %v1650_v13, %v1646_v3  ;;  %v1652_v50 = vmax.f32 %v1620_v48, 0.0  ;;  %v1677_v32 = vpack.c.bf16 %v1649_v12, %v1645_v60  ;;  %v1531_v23 = vpop.permute.xlu0 %1530  ;;  %v1497_v11 = vld [vmem:[%s3399_s11 + $0x320] sm:$0xff]  ;;  %v1498_v13 = vld [vmem:[%s3399_s11 + $0x328] sm:$0xff]  ;;  %v1499_v48 = vld [vmem:[%s3399_s11 + $0x330] sm:$0xff] }
 0x533   : >> { %v1660_v38 = vmax.f32 %v1628_v27, 0.0  ;;  %v1551_v31 = vmul.f32 %v1519_v47, %v1487_v25  ;;  %v1627_v9 = vadd.f32 %v1591_v55, %v1555_v1  ;;  %v1679_v29 = vpack.c.bf16 %v1651_v16, %v1647_v4  ;;  %v1500_v12 = vld [vmem:[%s3399_s11 + $0x338] sm:$0xff] }
 0x534   : >> { %v1527_v14 = vpop.permute.xlu1 %1526  ;;  %1711 = vmatprep.subr.bf16.mxu0 %v1678_v7  ;;  %v1680_v54 = vpack.c.bf16 %v1652_v50, %v1648_v49  ;;  %v1654_v56 = vmax.f32 %v1622_v62, 0.0  ;;  %v1656_v3 = vmax.f32 %v1624_v63, 0.0  ;;  %v1621_v21 = vadd.f32 %v3395_v30, %v1549_v42 }
 0x535   : >> { %v1557_v57 = vmul.f32 %v1527_v14, %v1493_v51  ;;  %v1558_v10 = vmul.f32 %v1527_v14, %v1494_v19  ;;  %1712 = vmatpush1.bf16.msra.mxu0 %v1677_v32  ;;  %v1657_v27 = vmax.f32 %v1625_v37, 0.0  ;;  %v1559_v16 = vmul.f32 %v1527_v14, %v1495_v22 }
 0x536   : >> { %1754 = vmatprep.subr.bf16.mxu1 %v1680_v54  ;;  %v1682_v47 = vpack.c.bf16 %v1658_v41, %v1654_v56  ;;  %v1684_v1 = vpack.c.bf16 %v1660_v38, %v1656_v3  ;;  %v1653_v55 = vmax.f32 %v1621_v21, 0.0  ;;  %v1560_v25 = vmul.f32 %v1527_v14, %v1496_v0  ;;  %v1535_v4 = vpop.permute.xlu0 %1534  ;;  %v1502_v0 = vld [vmem:[%s3399_s11 + $0x3c8] sm:$0xff] }
 0x537   : >> { %1755 = vmatpush1.bf16.msra.mxu1 %v1679_v29  ;;  %v1623_v60 = vadd.f32 %v3395_v30, %v1551_v31  ;;  %v1659_v62 = vmax.f32 %v1627_v9, 0.0  ;;  %v1561_v51 = vmul.f32 %v1531_v23, %v1497_v11  ;;  %v1562_v19 = vmul.f32 %v1531_v23, %v1498_v13  ;;  %v1501_v31 = vld [vmem:[%s3399_s11 + $0x3c0] sm:$0xff]  ;;  %v1504_v11 = vld [vmem:[%s3399_s11 + $0x3d8] sm:$0xff] }
 0x538   : >> { %1713 = vmatprep.subr.bf16.mxu0 %v1682_v47  ;;  %1756 = vmatprep.subr.bf16.mxu1 %v1684_v1  ;;  %v1681_v42 = vpack.c.bf16 %v1657_v27, %v1653_v55  ;;  %v1563_v32 = vmul.f32 %v1531_v23, %v1499_v48  ;;  %v1564_v14 = vmul.f32 %v1531_v23, %v1500_v12  ;;  %v1505_v12 = vld [vmem:[%s3399_s11 + $0x460] sm:$0xff] }
 0x539   : >> { %v1596_v63 = vpop.permute.xlu1 %1595  ;;  %v1655_v41 = vmax.f32 %v1623_v60, 0.0  ;;  %v1565_v27 = vmul.f32 %v1535_v4, %v1501_v31 }
 0x53a   : >> { %v1629_v49 = vadd.f32 %v1596_v63, %v1557_v57  ;;  %v1630_v7 = vadd.f32 %v1596_v63, %v1558_v10  ;;  %v1631_v37 = vadd.f32 %v1596_v63, %v1559_v16  ;;  %v1632_v50 = vadd.f32 %v1596_v63, %v1560_v25  ;;  %1714 = vmatpush1.bf16.msra.mxu0 %v1681_v42  ;;  %v1503_v10 = vld [vmem:[%s3399_s11 + $0x3d0] sm:$0xff] }
 0x53b   : >> { %v1683_v30 = vpack.c.bf16 %v1659_v62, %v1655_v41  ;;  %v1606_v13 = vpop.permute.xlu0 %1605  ;;  %v1566_v63 = vmul.f32 %v1535_v4, %v1502_v0  ;;  %v1567_v42 = vmul.f32 %v1535_v4, %v1503_v10  ;;  %v1506_v41 = vld [vmem:[%s3399_s11 + $0x468] sm:$0xff] }
 0x53c   : >> { %v1662_v56 = vmax.f32 %v1630_v7, 0.0  ;;  %v1664_v3 = vmax.f32 %v1632_v50, 0.0  ;;  %v1661_v21 = vmax.f32 %v1629_v49, 0.0  ;;  %v1663_v57 = vmax.f32 %v1631_v37, 0.0  ;;  %v1507_v7 = vld [vmem:[%s3399_s11 + $0x470] sm:$0xff]  ;;  %v1508_v37 = vld [vmem:[%s3399_s11 + $0x478] sm:$0xff] }
 0x53d   : >> { %v1601_v38 = vpop.permute.xlu1 %1600  ;;  %1757 = vmatpush1.bf16.msra.mxu1 %v1683_v30  ;;  %v1568_v49 = vmul.f32 %v1535_v4, %v1504_v11  ;;  %v1637_v50 = vadd.f32 %v1606_v13, %v1565_v27 }
 0x53e   : >> { %v1633_v9 = vadd.f32 %v1601_v38, %v1561_v51  ;;  %v1634_v29 = vadd.f32 %v1601_v38, %v1562_v19  ;;  %v1635_v54 = vadd.f32 %v1601_v38, %v1563_v32  ;;  %v1636_v22 = vadd.f32 %v1601_v38, %v1564_v14 }
 0x53f   : >> { %v1638_v51 = vadd.f32 %v1606_v13, %v1566_v63  ;;  %v1639_v19 = vadd.f32 %v1606_v13, %v1567_v42  ;;  %v1640_v32 = vadd.f32 %v1606_v13, %v1568_v49  ;;  %v2161_v13 = vcombine.low %v3246_v45, %v3251_v2 }
 0x540   : >> { %v1666_v23 = vmax.f32 %v1634_v29, 0.0  ;;  %v1668_v47 = vmax.f32 %v1636_v22, 0.0  ;;  %v1665_v1 = vmax.f32 %v1633_v9, 0.0  ;;  %v1667_v55 = vmax.f32 %v1635_v54, 0.0 }
 0x541   : >> { %v1670_v0 = vmax.f32 %v1638_v51, 0.0 }
 0x542   : >> { %v1539_v48 = vpop.permute.xlu1 %1538  ;;  %v1686_v16 = vpack.c.bf16 %v1666_v23, %v1662_v56  ;;  %v1688_v25 = vpack.c.bf16 %v1668_v47, %v1664_v3  ;;  %v1685_v60 = vpack.c.bf16 %v1665_v1, %v1661_v21  ;;  %v1687_v62 = vpack.c.bf16 %v1667_v55, %v1663_v57 }
 0x543   : >> { %v1569_v14 = vmul.f32 %v1539_v48, %v1505_v12  ;;  %v1570_v30 = vmul.f32 %v1539_v48, %v1506_v41  ;;  %v1571_v38 = vmul.f32 %v1539_v48, %v1507_v7  ;;  %v1572_v31 = vmul.f32 %v1539_v48, %v1508_v37 }
 0x544   : >> { %1715 = vmatprep.subr.bf16.mxu0 %v1686_v16  ;;  %1758 = vmatprep.subr.bf16.mxu1 %v1688_v25  ;;  %v1672_v56 = vmax.f32 %v1640_v32, 0.0  ;;  %v1669_v3 = vmax.f32 %v1637_v50, 0.0  ;;  %v1671_v21 = vmax.f32 %v1639_v19, 0.0 }
 0x545   : >> { %1716 = vmatpush1.bf16.msra.mxu0 %v1685_v60  ;;  %1759 = vmatpush1.bf16.msra.mxu1 %v1687_v62 }
 0x547   : >> { %v1611_v9 = vpop.permute.xlu1 %1610 }
 0x548   : >> { %v1641_v29 = vadd.f32 %v1611_v9, %v1569_v14  ;;  %v1642_v54 = vadd.f32 %v1611_v9, %v1570_v30  ;;  %v1643_v22 = vadd.f32 %v1611_v9, %v1571_v38  ;;  %v1644_v4 = vadd.f32 %v1611_v9, %v1572_v31  ;;  %v1701_v30 = vpop.permute.xlu0 %1700 }
 0x54a   : >> { %v1674_v57 = vmax.f32 %v1642_v54, 0.0  ;;  %v1676_v10 = vmax.f32 %v1644_v4, 0.0  ;;  %v1673_v11 = vmax.f32 %v1641_v29, 0.0  ;;  %v1675_v23 = vmax.f32 %v1643_v22, 0.0 }
 0x54b   : >> { %v1696_v48 = vpop.permute.xlu1 %1695 }
 0x54c   : >> { %v1690_v47 = vpack.c.bf16 %v1674_v57, %v1670_v0  ;;  %v1692_v1 = vpack.c.bf16 %v1676_v10, %v1672_v56  ;;  %v1689_v55 = vpack.c.bf16 %v1673_v11, %v1669_v3  ;;  %v1691_v27 = vpack.c.bf16 %v1675_v23, %v1671_v21 }
 0x54e   : >> { %1717 = vmatprep.subr.bf16.mxu0 %v1690_v47  ;;  %1760 = vmatprep.subr.bf16.mxu1 %v1692_v1 }
 0x54f   : >> { %1718 = vmatpush1.bf16.msra.mxu0 %v1689_v55  ;;  %1761 = vmatpush1.bf16.msra.mxu1 %v1691_v27 }
 0x552   : >> { %2162 = vmatmul.mubr.msk.bf16.vlgmr.msra.gmra.mrb[0].mxu0 %vm1113_vm2, %v2161_v13  ;;  %2163 = vmatmul.mubr.msk.bf16.vlgmr.msra.gmra.mrb[0].mxu1 %vm1113_vm2, %v2161_v13 }
 0x625   : >> { %v1745_v12 = vpop.f32.mrb[0].mxu0  ;;  %v1788_v16 = vpop.f32.mrb[0].mxu1 }
 0x626   : >> { %v3441_v25 = vadd.f32 %v1745_v12, %v1696_v48  ;;  %v3443_v60 = vadd.f32 %v1788_v16, %v1696_v48  ;;  %v1747_v62 = vpop.f32.mrb[1].mxu0  ;;  %v1790_v63 = vpop.f32.mrb[1].mxu1 }
 0x627   : >> { %v3445_v42 = vadd.f32 %v1747_v62, %v1696_v48  ;;  %v3447_v49 = vadd.f32 %v1790_v63, %v1696_v48  ;;  %v1749_v41 = vpop.f32.mrb[2].mxu0  ;;  %v1792_v7 = vpop.f32.mrb[2].mxu1 }
 0x628   : >> { %v2164_v37 = vmul.f32 -1.442695, %v3441_v25  ;;  %v1839_v50 = vmul.f32 %v3441_v25, %v3441_v25  ;;  %v2166_v51 = vmul.f32 -1.442695, %v3443_v60  ;;  %v1841_v19 = vmul.f32 %v3443_v60, %v3443_v60  ;;  %v1751_v32 = vpop.f32.mrb[3].mxu0  ;;  %v1794_v14 = vpop.f32.mrb[3].mxu1 }
 0x629   : >> { %v2165_v38 = vmul.f32 -1.442695, %v3445_v42  ;;  %v1840_v31 = vmul.f32 %v3445_v42, %v3445_v42  ;;  %v2167_v9 = vmul.f32 -1.442695, %v3447_v49  ;;  %v1842_v29 = vmul.f32 %v3447_v49, %v3447_v49 }
 0x62a   : >> { %2479 = vpow2.f32 %v2164_v37  ;;  %v1847_v54 = vrot.slane %v1839_v50, 6  ;;  %v1849_v22 = vrot.slane %v1841_v19, 6  ;;  %v1750_v4 = vadd.f32 %v1749_v41, %v1701_v30 }
 0x62b   : >> { %2481 = vpow2.f32 %v2166_v51  ;;  %v1848_v0 = vrot.slane %v1840_v31, 6  ;;  %v1850_v56 = vrot.slane %v1842_v29, 6  ;;  %v1793_v3 = vadd.f32 %v1792_v7, %v1701_v30 }
 0x62c   : >> { %v1856_v21 = vsel %vm1855_vm4, %v1847_v54, 0.0  ;;  %v1870_v57 = vsel %vm1855_vm4, %v1849_v22, 0.0  ;;  %2483 = vpow2.f32 %v2165_v38  ;;  %1907 = vst [vmem:[%s3458_s12 + $0xa0] sm:$0xff] %v1750_v4  ;;  %v1752_v10 = vadd.f32 %v1751_v32, %v1701_v30 }
 0x62d   : >> { %v1857_v11 = vrot.slane %v1856_v21, 4  ;;  %v1871_v23 = vrot.slane %v1870_v57, 4  ;;  %v1863_v47 = vsel %vm1855_vm4, %v1848_v0, 0.0  ;;  %2485 = vpow2.f32 %v2167_v9  ;;  %1909 = vst [vmem:[%s3458_s12 + $0xb0] sm:$0xff] %v1793_v3 }
 0x62e   : >> { %v1864_v1 = vrot.slane %v1863_v47, 4  ;;  %v1877_v55 = vsel %vm1855_vm4, %v1850_v56, 0.0  ;;  %1908 = vst [vmem:[%s3458_s12 + $0xa8] sm:$0xff] %v1752_v10  ;;  %v1795_v27 = vadd.f32 %v1794_v14, %v1701_v30 }
 0x62f   : >> { %v1858_v13 = vadd.f32 %v1857_v11, %v1856_v21  ;;  %v1872_v48 = vadd.f32 %v1871_v23, %v1870_v57  ;;  %v1878_v12 = vrot.slane %v1877_v55, 4 }
 0x630   : >> { %v1865_v16 = vadd.f32 %v1864_v1, %v1863_v47  ;;  %1910 = vst [vmem:[%s3458_s12 + $0xb8] sm:$0xff] %v1795_v27 }
 0x631   : >> { %v1859_v62 = vrot.slane %v1858_v13, 2  ;;  %v1873_v63 = vrot.slane %v1872_v48, 2  ;;  %v1879_v41 = vadd.f32 %v1878_v12, %v1877_v55 }
 0x632   : >> { %v1866_v7 = vrot.slane %v1865_v16, 2 }
 0x633   : >> { %v1860_v37 = vadd.f32 %v1859_v62, %v1858_v13  ;;  %v1874_v50 = vadd.f32 %v1873_v63, %v1872_v48  ;;  %v1880_v51 = vrot.slane %v1879_v41, 2 }
 0x634   : >> { %v2480_v19 = vpop.eup %2479  ;;  %v1867_v32 = vadd.f32 %v1866_v7, %v1865_v16 }
 0x635   : >> { %v2482_v38 = vpop.eup %2481  ;;  %v1809_v31 = vadd.f32 1.0, %v2480_v19  ;;  %v1861_v9 = vrot.slane %v1860_v37, 1  ;;  %v1875_v29 = vrot.slane %v1874_v50, 1  ;;  %v1881_v54 = vadd.f32 %v1880_v51, %v1879_v41 }
 0x636   : >> { %v2484_v14 = vpop.eup %2483  ;;  %v1811_v30 = vadd.f32 1.0, %v2482_v38  ;;  %v1868_v22 = vrot.slane %v1867_v32, 1 }
 0x637   : >> { %v2486_v4 = vpop.eup %2485  ;;  %2487 = vrcp.f32 %v1809_v31  ;;  %v1862_v0 = vadd.f32 %v1861_v9, %v1860_v37  ;;  %v1876_v56 = vadd.f32 %v1875_v29, %v1874_v50  ;;  %v1810_v3 = vadd.f32 1.0, %v2484_v14 }
 0x638   : >> { %2489 = vrcp.f32 %v1811_v30  ;;  %v1869_v21 = vadd.f32 %v1868_v22, %v1867_v32  ;;  %v1812_v57 = vadd.f32 1.0, %v2486_v4  ;;  %v1882_v10 = vrot.slane %v1881_v54, 1 }
 0x639   : >> { %v1884_v11 = vmax.f32 %v1862_v0, 1e-24  ;;  %v1886_v23 = vmax.f32 %v1876_v56, 1e-24  ;;  %2491 = vrcp.f32 %v1810_v3 }
 0x63a   : >> { %v1885_v47 = vmax.f32 %v1869_v21, 1e-24  ;;  %2493 = vrcp.f32 %v1812_v57  ;;  %v1883_v1 = vadd.f32 %v1882_v10, %v1881_v54 }
 0x63b   : >> { %2495 = vrsqrt.f32 %v1884_v11 }
 0x63c   : >> { %2497 = vrsqrt.f32 %v1886_v23  ;;  %v1887_v55 = vmax.f32 %v1883_v1, 1e-24 }
 0x63d   : >> { %2499 = vrsqrt.f32 %v1885_v47 }
 0x63e   : >> { %2501 = vrsqrt.f32 %v1887_v55 }
 0x641   : >> { %v2488_v27 = vpop.eup %2487 }
 0x642   : >> { %v2490_v13 = vpop.eup %2489  ;;  %v1821_v48 = vmax.f32 %v2488_v27, 0.0001  ;;  %v2168_v41 = vadd.f32 -0.5, %v2488_v27 }
 0x643   : >> { %v2492_v12 = vpop.eup %2491  ;;  %v1823_v16 = vmax.f32 %v2490_v13, 0.0001  ;;  %v2170_v51 = vadd.f32 -0.5, %v2490_v13 }
 0x644   : >> { %v2494_v62 = vpop.eup %2493  ;;  %v1825_v63 = vmin.f32 %v1821_v48, 0.9999  ;;  %v1822_v7 = vmax.f32 %v2492_v12, 0.0001  ;;  %v2169_v29 = vadd.f32 -0.5, %v2492_v12 }
 0x645   : >> { %v2496_v37 = vpop.eup %2495  ;;  %v1827_v50 = vmin.f32 %v1823_v16, 0.9999  ;;  %v1824_v19 = vmax.f32 %v2494_v62, 0.0001  ;;  %v2171_v4 = vadd.f32 -0.5, %v2494_v62 }
 0x646   : >> { %v2498_v32 = vpop.eup %2497  ;;  %v1835_v38 = vsel %vm1465_vm3, %v1825_v63, %v2168_v41  ;;  %v1892_v31 = vmul.f32 %v2496_v37, %v3441_v25  ;;  %v1826_v9 = vmin.f32 %v1822_v7, 0.9999  ;;  %1470 = sbr.rel (!%p1468_p5) target bundleno = 1184 (0x4a0), region = 128 }
 0x647   : >> { %v2500_v54 = vpop.eup %2499  ;;  %v1837_v14 = vsel %vm1465_vm3, %v1827_v50, %v2170_v51  ;;  %v1894_v30 = vmul.f32 %v2498_v32, %v3443_v60  ;;  %v1828_v22 = vmin.f32 %v1824_v19, 0.9999 }
 0x648   : >> { %v2502_v0 = vpop.eup %2501  ;;  %v1897_v56 = vsel %vm1896_vm5, %v1835_v38, %v1892_v31  ;;  %v1836_v3 = vsel %vm1465_vm3, %v1826_v9, %v2169_v29  ;;  %v1893_v25 = vmul.f32 %v2500_v54, %v3445_v42 }
 0x649   : >> { %1903 = vst [vmem:[%s3458_s12] sm:$0xff] %v1897_v56  ;;  %v1899_v21 = vsel %vm1896_vm5, %v1837_v14, %v1894_v30  ;;  %v1838_v57 = vsel %vm1465_vm3, %v1828_v22, %v2171_v4  ;;  %v1895_v10 = vmul.f32 %v2502_v0, %v3447_v49 }
 0x64a   : >> { %1905 = vst [vmem:[%s3458_s12 + $0x10] sm:$0xff] %v1899_v21  ;;  %v1898_v60 = vsel %vm1896_vm5, %v1836_v3, %v1893_v25 }
 0x64b   : >> { %1904 = vst [vmem:[%s3458_s12 + $0x8] sm:$0xff] %v1898_v60  ;;  %v1900_v11 = vsel %vm1896_vm5, %v1838_v57, %v1895_v10 }
 0x64c   : >> { %1906 = vst [vmem:[%s3458_s12 + $0x18] sm:$0xff] %v1900_v11 }
 0x64d PF: > { %s20_s13 = sadd.s32 1, %s2581_s13  }
 0x64e   : > { %p17_p6 = scmp.ge.s32.totalorder %s20_s13, 4  }
 0x650   :  { %19 = sbr.rel (!%p17_p6) target bundleno = 1 (0x1), region = 139 }

</bundles_post_ra>
